<compile_context>
chip_gen: v6e
topology: v6e:2x2x1
jax: 0.10.0
libtpu: 0.0.40
codegen_flags: <defaults>
</compile_context>

<pallas_src>
import functools
import math

import jax
import jax.numpy as jnp
from jax.experimental import pallas as pl
from jax.experimental.pallas import tpu as pltpu


# ----------------------------- in-kernel math ------------------------------

def _layer_norm(x, gamma, beta, eps=1e-5):
    # f32 throughout (vector-unit math stays f32 on all generations).
    mean = jnp.mean(x, axis=-1, keepdims=True)
    var = jnp.mean((x - mean) ** 2, axis=-1, keepdims=True)
    return (x - mean) * jax.lax.rsqrt(var + eps) * gamma + beta


def _split_heads(x2, batch, seq, num_heads, dh):
    """(batch*seq, D) f32 -> (num_heads*batch, seq, dh) bf16.

    One bf16 cast + H static lane slices concatenated along the (cheap)
    leading axis; keeps the attention einsums head-batched without the
    per-head f32 jnp.stack relayouts of the previous version.
    """
    x3 = x2.astype(jnp.bfloat16).reshape(batch, seq, num_heads * dh)
    parts = [x3[:, :, h * dh:(h + 1) * dh] for h in range(num_heads)]
    return jnp.concatenate(parts, axis=0)


def _merge_heads(ctx, batch, seq, num_heads, dh):
    """(num_heads*batch, seq, dh) f32 -> (batch*seq, D) bf16 (cast before merge)."""
    ctx = ctx.astype(jnp.bfloat16)
    parts = [ctx[h * batch:(h + 1) * batch] for h in range(num_heads)]
    merged = jnp.concatenate(parts, axis=-1)          # (batch, seq, D)
    return merged.reshape(batch * seq, num_heads * dh)


def _attention_core(q2, k2, v2, wo, bo, *, num_heads, batch, s_q, s_k, mask):
    """q2: (B*s_q, D) f32 (already scaled), k2/v2: (B*s_k, D) f32."""
    d = q2.shape[-1]
    dh = d // num_heads

    qh = _split_heads(q2, batch, s_q, num_heads, dh)   # (H*B, s_q, dh) bf16
    kh = _split_heads(k2, batch, s_k, num_heads, dh)
    vh = _split_heads(v2, batch, s_k, num_heads, dh)

    # Scores for all (head, batch) pairs in one batched contraction.
    s = jnp.einsum('hqd,hkd->hqk', qh, kh,
                   preferred_element_type=jnp.float32)  # (H*B, s_q, s_k) f32
    if mask is not None:
        s = s + mask                                    # additive (s_q, s_k) bias

    # Softmax in f32; normalization via approximate reciprocal (EUP slot).
    s = s - jnp.max(s, axis=-1, keepdims=True)
    p = jnp.exp(s)
    denom = jnp.sum(p, axis=-1, keepdims=True)
    p = p * pl.reciprocal(denom, approx=True)

    ctx = jnp.einsum('hqk,hkd->hqd', p.astype(jnp.bfloat16), vh,
                     preferred_element_type=jnp.float32)  # (H*B, s_q, dh) f32

    attn = _merge_heads(ctx, batch, s_q, num_heads, dh)   # (B*s_q, D) bf16
    return jnp.dot(attn, wo, preferred_element_type=jnp.float32) + bo


def _self_attention(x2, w_ref, b_ref, *, num_heads, batch, seq, mask):
    """Fused QKV projection. w_ref block: (1, D, 4D) = [Wq|Wk|Wv|Wo] (bf16)."""
    d = x2.shape[-1]
    dh = d // num_heads
    wqkv = w_ref[0, :, 0:3 * d]
    wo = w_ref[0, :, 3 * d:4 * d]
    bqkv = b_ref[0, :, 0:3 * d]
    bo = b_ref[0, :, 3 * d:4 * d]

    qkv = jnp.dot(x2.astype(jnp.bfloat16), wqkv,
                  preferred_element_type=jnp.float32) + bqkv     # (B*S, 3D)
    q = qkv[:, 0:d] * (1.0 / math.sqrt(dh))    # fold 1/sqrt(dh) once into Q
    k = qkv[:, d:2 * d]
    v = qkv[:, 2 * d:3 * d]
    return _attention_core(q, k, v, wo, bo, num_heads=num_heads,
                           batch=batch, s_q=seq, s_k=seq, mask=mask)


def _cross_attention(x2, mem2, w_ref, b_ref, *, num_heads, batch, s_q, s_k):
    """w_ref block: (1, D, 4D) = [Wq | Wk | Wv | Wo] (KV fused for one matmul)."""
    d = x2.shape[-1]
    dh = d // num_heads
    wq = w_ref[0, :, 0:d]
    wkv = w_ref[0, :, d:3 * d]
    wo = w_ref[0, :, 3 * d:4 * d]
    bq = b_ref[0, :, 0:d]
    bkv = b_ref[0, :, d:3 * d]
    bo = b_ref[0, :, 3 * d:4 * d]

    q = (jnp.dot(x2.astype(jnp.bfloat16), wq,
                 preferred_element_type=jnp.float32) + bq) * (1.0 / math.sqrt(dh))
    kv = jnp.dot(mem2.astype(jnp.bfloat16), wkv,
                 preferred_element_type=jnp.float32) + bkv       # (B*s_k, 2D)
    k = kv[:, 0:d]
    v = kv[:, d:2 * d]
    return _attention_core(q, k, v, wo, bo, num_heads=num_heads,
                           batch=batch, s_q=s_q, s_k=s_k, mask=None)


def _ffn(x2, w1_ref, b1_ref, w2_ref, b2):
    h = jnp.dot(x2.astype(jnp.bfloat16), w1_ref[0],
                preferred_element_type=jnp.float32) + b1_ref[0]
    h = jnp.maximum(h, 0.0)
    return jnp.dot(h.astype(jnp.bfloat16), w2_ref[0],
                   preferred_element_type=jnp.float32) + b2


# ------------------------------- kernels -----------------------------------

def _encoder_stack_kernel(x_ref, w_attn, b_attn, w1, b1, w2, lnv,
                          o_ref, *, num_heads):
    """grid = (num_layers,).  o_ref (B, S, D) carries the residual stream."""
    B, S, D = x_ref.shape
    layer = pl.program_id(0)

    @pl.when(layer == 0)
    def _():
        o_ref[...] = x_ref[...]

    x2 = o_ref[...].reshape(B * S, D)                 # f32 residual stream

    # lnv rows: [b2, g1, be1, g2, be2]
    b2 = lnv[0, 0:1, :]
    g1, be1 = lnv[0, 1:2, :], lnv[0, 2:3, :]
    g2, be2 = lnv[0, 3:4, :], lnv[0, 4:5, :]

    attn = _self_attention(x2, w_attn, b_attn, num_heads=num_heads,
                           batch=B, seq=S, mask=None)
    x2 = _layer_norm(x2 + attn, g1, be1)
    ff = _ffn(x2, w1, b1, w2, b2)
    x2 = _layer_norm(x2 + ff, g2, be2)

    o_ref[...] = x2.reshape(B, S, D)


def _decoder_stack_kernel(x_ref, mem_ref, mask_ref,
                          w_self, b_self, w_cross, b_cross,
                          w1, b1, w2, lnv, o_ref, *, num_heads):
    B, St, D = x_ref.shape
    Ss = mem_ref.shape[1]
    layer = pl.program_id(0)

    @pl.when(layer == 0)
    def _():
        o_ref[...] = x_ref[...]

    x2 = o_ref[...].reshape(B * St, D)
    mem2 = mem_ref[...].reshape(B * Ss, D)
    causal = mask_ref[...]                            # (St, St) additive bias

    # lnv rows: [b2, g1, be1, g2, be2, g3, be3]
    b2 = lnv[0, 0:1, :]
    g1, be1 = lnv[0, 1:2, :], lnv[0, 2:3, :]
    g2, be2 = lnv[0, 3:4, :], lnv[0, 4:5, :]
    g3, be3 = lnv[0, 5:6, :], lnv[0, 6:7, :]

    sa = _self_attention(x2, w_self, b_self, num_heads=num_heads,
                         batch=B, seq=St, mask=causal)
    x2 = _layer_norm(x2 + sa, g1, be1)

    ca = _cross_attention(x2, mem2, w_cross, b_cross, num_heads=num_heads,
                          batch=B, s_q=St, s_k=Ss)
    x2 = _layer_norm(x2 + ca, g2, be2)

    ff = _ffn(x2, w1, b1, w2, b2)
    x2 = _layer_norm(x2 + ff, g3, be3)

    o_ref[...] = x2.reshape(B, St, D)


# ----------------------------- pallas wrappers ------------------------------

def _compiler_params():
    # ~3/4 of physical VMEM: ~96 MiB on v5e/v6e (128 MiB), ~48 MiB on v7x (64 MiB).
    cap = 128 * 1024 * 1024
    try:
        cap = int(getattr(pltpu.get_tpu_info(), "vmem_capacity_bytes", cap))
    except Exception:
        pass
    return pltpu.CompilerParams(
        dimension_semantics=("arbitrary",),          # layers are a sequential carry
        vmem_limit_bytes=(cap * 3) // 4,
    )


def encoder_stack(x, params, num_heads):
    B, S, D = x.shape
    L = params["w_attn"].shape[0]
    F = params["w1"].shape[-1]
    assert D % num_heads == 0, "d_model must be divisible by num_heads"

    in_specs = [
        pl.BlockSpec((B, S, D), lambda l: (0, 0, 0)),        # residual stream input
        pl.BlockSpec((1, D, 4 * D), lambda l: (l, 0, 0)),    # [Wq|Wk|Wv|Wo]
        pl.BlockSpec((1, 1, 4 * D), lambda l: (l, 0, 0)),    # [bq|bk|bv|bo]
        pl.BlockSpec((1, D, F), lambda l: (l, 0, 0)),        # W1
        pl.BlockSpec((1, 1, F), lambda l: (l, 0, 0)),        # b1
        pl.BlockSpec((1, F, D), lambda l: (l, 0, 0)),        # W2
        pl.BlockSpec((1, 5, D), lambda l: (l, 0, 0)),        # [b2,g1,be1,g2,be2]
    ]
    return pl.pallas_call(
        functools.partial(_encoder_stack_kernel, num_heads=num_heads),
        out_shape=jax.ShapeDtypeStruct((B, S, D), jnp.float32),
        grid=(L,),
        in_specs=in_specs,
        out_specs=pl.BlockSpec((B, S, D), lambda l: (0, 0, 0)),
        compiler_params=_compiler_params(),
    )(x, params["w_attn"], params["b_attn"], params["w1"], params["b1"],
      params["w2"], params["ln_vecs"])


def decoder_stack(x, mem, params, num_heads):
    B, St, D = x.shape
    _, Ss, _ = mem.shape
    L = params["w_self"].shape[0]
    F = params["w1"].shape[-1]
    assert D % num_heads == 0, "d_model must be divisible by num_heads"

    # Causal additive bias built once in the wrapper (fetched once; constant index).
    row = jnp.arange(St, dtype=jnp.int32)[:, None]
    col = jnp.arange(St, dtype=jnp.int32)[None, :]
    causal_mask = jnp.where(col <= row, 0.0, -1e9).astype(jnp.float32)

    in_specs = [
        pl.BlockSpec((B, St, D), lambda l: (0, 0, 0)),       # target stream
        pl.BlockSpec((B, Ss, D), lambda l: (0, 0, 0)),       # encoder memory
        pl.BlockSpec((St, St), lambda l: (0, 0)),            # causal bias
        pl.BlockSpec((1, D, 4 * D), lambda l: (l, 0, 0)),    # self  [Wq|Wk|Wv|Wo]
        pl.BlockSpec((1, 1, 4 * D), lambda l: (l, 0, 0)),    # self  biases
        pl.BlockSpec((1, D, 4 * D), lambda l: (l, 0, 0)),    # cross [Wq|Wk|Wv|Wo]
        pl.BlockSpec((1, 1, 4 * D), lambda l: (l, 0, 0)),    # cross biases
        pl.BlockSpec((1, D, F), lambda l: (l, 0, 0)),        # W1
        pl.BlockSpec((1, 1, F), lambda l: (l, 0, 0)),        # b1
        pl.BlockSpec((1, F, D), lambda l: (l, 0, 0)),        # W2
        pl.BlockSpec((1, 7, D), lambda l: (l, 0, 0)),        # [b2,g1,be1,g2,be2,g3,be3]
    ]
    return pl.pallas_call(
        functools.partial(_decoder_stack_kernel, num_heads=num_heads),
        out_shape=jax.ShapeDtypeStruct((B, St, D), jnp.float32),
        grid=(L,),
        in_specs=in_specs,
        out_specs=pl.BlockSpec((B, St, D), lambda l: (0, 0, 0)),
        compiler_params=_compiler_params(),
    )(x, mem, causal_mask,
      params["w_self"], params["b_self"], params["w_cross"], params["b_cross"],
      params["w1"], params["b1"], params["w2"], params["ln_vecs"])


# ------------------------------ parameters ----------------------------------

def init_transformer_params(key, D, ffn_expand, num_layers,
                            weight_dtype=jnp.bfloat16):
    """Per-layer parameters, packed and stacked along a leading [L] axis.

    Matmul weights are bf16 (MXU operands); biases / layernorm params are f32.
    Attention projections are fused as [Wq|Wk|Wv|Wo] -> (L, D, 4D).
    """
    F = D * ffn_expand
    L = num_layers
    keys = jax.random.split(key, 6)

    def w(k, shape):
        return (0.02 * jax.random.normal(k, shape, jnp.float32)).astype(weight_dtype)

    def ln_pack(n_rows):
        # rows alternate: b2(0), g(1), be(0), g(1), be(0), ...
        rows = [jnp.zeros((L, D), jnp.float32)]
        for _ in range((n_rows - 1) // 2):
            rows.append(jnp.ones((L, D), jnp.float32))
            rows.append(jnp.zeros((L, D), jnp.float32))
        return jnp.stack(rows, axis=1)                     # (L, n_rows, D)

    enc = {
        "w_attn": w(keys[0], (L, D, 4 * D)),
        "b_attn": jnp.zeros((L, 1, 4 * D), jnp.float32),
        "w1": w(keys[1], (L, D, F)),
        "b1": jnp.zeros((L, 1, F), jnp.float32),
        "w2": w(keys[2], (L, F, D)),
        "ln_vecs": ln_pack(5),                             # b2, g1, be1, g2, be2
    }
    dec = {
        "w_self": w(keys[3], (L, D, 4 * D)),
        "b_self": jnp.zeros((L, 1, 4 * D), jnp.float32),
        "w_cross": w(keys[4], (L, D, 4 * D)),
        "b_cross": jnp.zeros((L, 1, 4 * D), jnp.float32),
        "w1": w(keys[5], (L, D, F)),
        "b1": jnp.zeros((L, 1, F), jnp.float32),
        "w2": w(keys[0], (L, F, D)),
        "ln_vecs": ln_pack(7),                             # b2, g1..be3
    }
    return {"encoder": enc, "decoder": dec}


# ------------------------------ full forward ---------------------------------

def transformer_forward(params, source, target, num_heads):
    encoder_output = encoder_stack(source, params["encoder"], num_heads)
    decoder_output = decoder_stack(target, encoder_output,
                                   params["decoder"], num_heads)
    return decoder_output


# --------------------------------- main --------------------------------------

if __name__ == "__main__":
    # Small demo, but lane-dense: D multiple of 128, S multiple of 8.
    B, SEQ, D, HEADS, FFN_EXPAND, LAYERS = 2, 8, 128, 4, 2, 2

    key = jax.random.PRNGKey(0)
    k_src, k_tgt, k_par = jax.random.split(key, 3)
    source = jax.random.normal(k_src, (B, SEQ, D), jnp.float32)
    target = jax.random.normal(k_tgt, (B, SEQ, D), jnp.float32)

    params = init_transformer_params(k_par, D, FFN_EXPAND, LAYERS)

    out = transformer_forward(params, source, target, HEADS)
    out = jax.block_until_ready(out)
    assert out.shape == (B, SEQ, D) and out.dtype == jnp.float32
    print("KERNEL_OK")
</pallas_src>

<mosaic_0001>
module attributes {stable_mosaic.version = 11 : i64} {
  func.func @_encoder_stack_kernel(%arg0: i32, %arg1: memref<2x8x128xf32, #tpu.memory_space<vmem>>, %arg2: memref<1x128x512xbf16, #tpu.memory_space<vmem>>, %arg3: memref<1x1x512xf32, #tpu.memory_space<vmem>>, %arg4: memref<1x128x256xbf16, #tpu.memory_space<vmem>>, %arg5: memref<1x1x256xf32, #tpu.memory_space<vmem>>, %arg6: memref<1x256x128xbf16, #tpu.memory_space<vmem>>, %arg7: memref<1x5x128xf32, #tpu.memory_space<vmem>>, %arg8: memref<2x8x128xf32, #tpu.memory_space<vmem>>) attributes {dimension_semantics = [#tpu.dimension_semantics<arbitrary>], iteration_bounds = array<i64: 2>, scalar_prefetch = 0 : i64, scratch_operands = 0 : i64, tpu.core_type = #tpu.core_type<tc>, window_params = [{pipeline_mode = #tpu.pipeline_mode<synchronous>, transform_indices = @transform_0, window_bounds = array<i64: 2, 8, 128>}, {transform_indices = @transform_1, window_bounds = array<i64: 1, 128, 512>}, {transform_indices = @transform_2, window_bounds = array<i64: 1, 1, 512>}, {transform_indices = @transform_3, window_bounds = array<i64: 1, 128, 256>}, {transform_indices = @transform_4, window_bounds = array<i64: 1, 1, 256>}, {transform_indices = @transform_5, window_bounds = array<i64: 1, 256, 128>}, {transform_indices = @transform_6, window_bounds = array<i64: 1, 5, 128>}, {pipeline_mode = #tpu.pipeline_mode<synchronous>, transform_indices = @transform_7, window_bounds = array<i64: 2, 8, 128>}]} {
    %c0_i32 = arith.constant 0 : i32
    %0 = arith.cmpi eq, %arg0, %c0_i32 : i32
    %1 = arith.extui %0 : i1 to i32
    %c0_i32_0 = arith.constant 0 : i32
    %2 = arith.cmpi ne, %1, %c0_i32_0 : i32
    scf.if %2 {
      %c0_56 = arith.constant 0 : index
      %c0_57 = arith.constant 0 : index
      %c0_58 = arith.constant 0 : index
      %140 = vector.load %arg1[%c0_56, %c0_57, %c0_58] : memref<2x8x128xf32, #tpu.memory_space<vmem>>, vector<2x8x128xf32>
      %c0_59 = arith.constant 0 : index
      %c0_60 = arith.constant 0 : index
      %c0_61 = arith.constant 0 : index
      %141 = vector.load %arg8[%c0_59, %c0_60, %c0_61] : memref<2x8x128xf32, #tpu.memory_space<vmem>>, vector<2x8x128xf32>
      tpu.vector_store %arg8[%c0_59, %c0_60, %c0_61], %140 {strides = array<i32>} : memref<2x8x128xf32, #tpu.memory_space<vmem>>, vector<2x8x128xf32>,
    } else {
    }
    %c0 = arith.constant 0 : index
    %c0_1 = arith.constant 0 : index
    %c0_2 = arith.constant 0 : index
    %3 = vector.load %arg8[%c0, %c0_1, %c0_2] : memref<2x8x128xf32, #tpu.memory_space<vmem>>, vector<2x8x128xf32>
    %4 = vector.shape_cast %3 : vector<2x8x128xf32> to vector<16x128xf32>
    %c0_3 = arith.constant 0 : index
    %c0_4 = arith.constant 0 : index
    %c0_5 = arith.constant 0 : index
    %5 = vector.load %arg7[%c0_3, %c0_4, %c0_5] : memref<1x5x128xf32, #tpu.memory_space<vmem>>, vector<1x1x128xf32>
    %6 = vector.shape_cast %5 : vector<1x1x128xf32> to vector<1x128xf32>
    %c0_6 = arith.constant 0 : index
    %c1 = arith.constant 1 : index
    %c0_7 = arith.constant 0 : index
    %7 = vector.load %arg7[%c0_6, %c1, %c0_7] : memref<1x5x128xf32, #tpu.memory_space<vmem>>, vector<1x1x128xf32>
    %8 = vector.shape_cast %7 : vector<1x1x128xf32> to vector<1x128xf32>
    %c0_8 = arith.constant 0 : index
    %c2 = arith.constant 2 : index
    %c0_9 = arith.constant 0 : index
    %9 = vector.load %arg7[%c0_8, %c2, %c0_9] : memref<1x5x128xf32, #tpu.memory_space<vmem>>, vector<1x1x128xf32>
    %10 = vector.shape_cast %9 : vector<1x1x128xf32> to vector<1x128xf32>
    %c0_10 = arith.constant 0 : index
    %c3 = arith.constant 3 : index
    %c0_11 = arith.constant 0 : index
    %11 = vector.load %arg7[%c0_10, %c3, %c0_11] : memref<1x5x128xf32, #tpu.memory_space<vmem>>, vector<1x1x128xf32>
    %12 = vector.shape_cast %11 : vector<1x1x128xf32> to vector<1x128xf32>
    %c0_12 = arith.constant 0 : index
    %c4 = arith.constant 4 : index
    %c0_13 = arith.constant 0 : index
    %13 = vector.load %arg7[%c0_12, %c4, %c0_13] : memref<1x5x128xf32, #tpu.memory_space<vmem>>, vector<1x1x128xf32>
    %14 = vector.shape_cast %13 : vector<1x1x128xf32> to vector<1x128xf32>
    %c0_14 = arith.constant 0 : index
    %c0_15 = arith.constant 0 : index
    %c0_16 = arith.constant 0 : index
    %15 = vector.load %arg2[%c0_14, %c0_15, %c0_16] : memref<1x128x512xbf16, #tpu.memory_space<vmem>>, vector<1x128x384xbf16>
    %16 = vector.shape_cast %15 : vector<1x128x384xbf16> to vector<128x384xbf16>
    %c0_17 = arith.constant 0 : index
    %c0_18 = arith.constant 0 : index
    %c384 = arith.constant 384 : index
    %17 = vector.load %arg2[%c0_17, %c0_18, %c384] : memref<1x128x512xbf16, #tpu.memory_space<vmem>>, vector<1x128x128xbf16>
    %18 = vector.shape_cast %17 : vector<1x128x128xbf16> to vector<128x128xbf16>
    %c0_19 = arith.constant 0 : index
    %c0_20 = arith.constant 0 : index
    %c0_21 = arith.constant 0 : index
    %19 = vector.load %arg3[%c0_19, %c0_20, %c0_21] : memref<1x1x512xf32, #tpu.memory_space<vmem>>, vector<1x1x384xf32>
    %20 = vector.shape_cast %19 : vector<1x1x384xf32> to vector<1x384xf32>
    %c0_22 = arith.constant 0 : index
    %c0_23 = arith.constant 0 : index
    %c384_24 = arith.constant 384 : index
    %21 = vector.load %arg3[%c0_22, %c0_23, %c384_24] : memref<1x1x512xf32, #tpu.memory_space<vmem>>, vector<1x1x128xf32>
    %22 = vector.shape_cast %21 : vector<1x1x128xf32> to vector<1x128xf32>
    %23 = arith.truncf %4 : vector<16x128xf32> to vector<16x128xbf16>
    %cst = arith.constant dense<0.000000e+00> : vector<16x384xf32>
    %24 = tpu.matmul %23, %16, %cst {dimension_numbers = #tpu.dot_dimension_numbers<[1], [0], [0], [1], [0, 0, 1, 1], [], []>} : vector<16x128xbf16>, vector<128x384xbf16>, vector<16x384xf32> -> vector<16x384xf32>
    %25 = vector.broadcast %20 : vector<1x384xf32> to vector<16x384xf32>
    %26 = arith.addf %24, %25 : vector<16x384xf32>
    %27 = vector.extract_strided_slice %26 {offsets = [0, 0], sizes = [16, 128], strides = [1, 1]} : vector<16x384xf32> to vector<16x128xf32>
    %cst_25 = arith.constant 0.176776692 : f32
    %28 = vector.broadcast %cst_25 : f32 to vector<16x128xf32>
    %29 = arith.mulf %27, %28 : vector<16x128xf32>
    %30 = vector.extract_strided_slice %26 {offsets = [0, 128], sizes = [16, 128], strides = [1, 1]} : vector<16x384xf32> to vector<16x128xf32>
    %31 = vector.extract_strided_slice %26 {offsets = [0, 256], sizes = [16, 128], strides = [1, 1]} : vector<16x384xf32> to vector<16x128xf32>
    %32 = arith.truncf %29 : vector<16x128xf32> to vector<16x128xbf16>
    %33 = vector.shape_cast %32 : vector<16x128xbf16> to vector<2x8x128xbf16>
    %34 = vector.extract_strided_slice %33 {offsets = [0, 0, 0], sizes = [2, 8, 32], strides = [1, 1, 1]} : vector<2x8x128xbf16> to vector<2x8x32xbf16>
    %35 = vector.extract_strided_slice %33 {offsets = [0, 0, 32], sizes = [2, 8, 32], strides = [1, 1, 1]} : vector<2x8x128xbf16> to vector<2x8x32xbf16>
    %36 = vector.extract_strided_slice %33 {offsets = [0, 0, 64], sizes = [2, 8, 32], strides = [1, 1, 1]} : vector<2x8x128xbf16> to vector<2x8x32xbf16>
    %37 = vector.extract_strided_slice %33 {offsets = [0, 0, 96], sizes = [2, 8, 32], strides = [1, 1, 1]} : vector<2x8x128xbf16> to vector<2x8x32xbf16>
    %38 = tpu.concatenate %34, %35, %36, %37 in 0 : vector<2x8x32xbf16>, vector<2x8x32xbf16>, vector<2x8x32xbf16>, vector<2x8x32xbf16> -> vector<8x8x32xbf16>
    %39 = arith.truncf %30 : vector<16x128xf32> to vector<16x128xbf16>
    %40 = vector.shape_cast %39 : vector<16x128xbf16> to vector<2x8x128xbf16>
    %41 = vector.extract_strided_slice %40 {offsets = [0, 0, 0], sizes = [2, 8, 32], strides = [1, 1, 1]} : vector<2x8x128xbf16> to vector<2x8x32xbf16>
    %42 = vector.extract_strided_slice %40 {offsets = [0, 0, 32], sizes = [2, 8, 32], strides = [1, 1, 1]} : vector<2x8x128xbf16> to vector<2x8x32xbf16>
    %43 = vector.extract_strided_slice %40 {offsets = [0, 0, 64], sizes = [2, 8, 32], strides = [1, 1, 1]} : vector<2x8x128xbf16> to vector<2x8x32xbf16>
    %44 = vector.extract_strided_slice %40 {offsets = [0, 0, 96], sizes = [2, 8, 32], strides = [1, 1, 1]} : vector<2x8x128xbf16> to vector<2x8x32xbf16>
    %45 = tpu.concatenate %41, %42, %43, %44 in 0 : vector<2x8x32xbf16>, vector<2x8x32xbf16>, vector<2x8x32xbf16>, vector<2x8x32xbf16> -> vector<8x8x32xbf16>
    %46 = arith.truncf %31 : vector<16x128xf32> to vector<16x128xbf16>
    %47 = vector.shape_cast %46 : vector<16x128xbf16> to vector<2x8x128xbf16>
    %48 = vector.extract_strided_slice %47 {offsets = [0, 0, 0], sizes = [2, 8, 32], strides = [1, 1, 1]} : vector<2x8x128xbf16> to vector<2x8x32xbf16>
    %49 = vector.extract_strided_slice %47 {offsets = [0, 0, 32], sizes = [2, 8, 32], strides = [1, 1, 1]} : vector<2x8x128xbf16> to vector<2x8x32xbf16>
    %50 = vector.extract_strided_slice %47 {offsets = [0, 0, 64], sizes = [2, 8, 32], strides = [1, 1, 1]} : vector<2x8x128xbf16> to vector<2x8x32xbf16>
    %51 = vector.extract_strided_slice %47 {offsets = [0, 0, 96], sizes = [2, 8, 32], strides = [1, 1, 1]} : vector<2x8x128xbf16> to vector<2x8x32xbf16>
    %52 = tpu.concatenate %48, %49, %50, %51 in 0 : vector<2x8x32xbf16>, vector<2x8x32xbf16>, vector<2x8x32xbf16>, vector<2x8x32xbf16> -> vector<8x8x32xbf16>
    "tpu.trace_start"() <{level = 10 : i32, message = "hqd,hkd->hqk"}> : () -> ()
    %cst_26 = arith.constant dense<0.000000e+00> : vector<8x8x8xf32>
    %53 = tpu.matmul %38, %45, %cst_26 {dimension_numbers = #tpu.dot_dimension_numbers<[2], [2], [1], [1], [0, 0, 0, 1, 1, 1], [0], [0]>} : vector<8x8x32xbf16>, vector<8x8x32xbf16>, vector<8x8x8xf32> -> vector<8x8x8xf32>
    "tpu.trace_stop"() : () -> ()
    %cst_27 = arith.constant dense<0xFF800000> : vector<8x8xf32>
    %54 = vector.multi_reduction <maximumf>, %53, %cst_27 [2] : vector<8x8x8xf32> to vector<8x8xf32>
    %55 = vector.shape_cast %54 : vector<8x8xf32> to vector<8x8x1xf32>
    %56 = vector.broadcast %55 : vector<8x8x1xf32> to vector<8x8x8xf32>
    %57 = arith.subf %53, %56 : vector<8x8x8xf32>
    %58 = math.exp %57 : vector<8x8x8xf32>
    %cst_28 = arith.constant dense<0.000000e+00> : vector<8x8xf32>
    %59 = vector.multi_reduction <add>, %58, %cst_28 [2] : vector<8x8x8xf32> to vector<8x8xf32>
    %60 = vector.shape_cast %59 : vector<8x8xf32> to vector<8x8x1xf32>
    %61 = tpu.reciprocal %60 {approx = true} : vector<8x8x1xf32> -> vector<8x8x1xf32>
    %62 = vector.broadcast %61 : vector<8x8x1xf32> to vector<8x8x8xf32>
    %63 = arith.mulf %58, %62 : vector<8x8x8xf32>
    %64 = arith.truncf %63 : vector<8x8x8xf32> to vector<8x8x8xbf16>
    "tpu.trace_start"() <{level = 10 : i32, message = "hqk,hkd->hqd"}> : () -> ()
    %cst_29 = arith.constant dense<0.000000e+00> : vector<8x8x32xf32>
    %65 = tpu.matmul %64, %52, %cst_29 {dimension_numbers = #tpu.dot_dimension_numbers<[2], [1], [1], [2], [0, 0, 0, 1, 1, 2], [0], [0]>} : vector<8x8x8xbf16>, vector<8x8x32xbf16>, vector<8x8x32xf32> -> vector<8x8x32xf32>
    "tpu.trace_stop"() : () -> ()
    %66 = arith.truncf %65 : vector<8x8x32xf32> to vector<8x8x32xbf16>
    %67 = vector.extract_strided_slice %66 {offsets = [0, 0, 0], sizes = [2, 8, 32], strides = [1, 1, 1]} : vector<8x8x32xbf16> to vector<2x8x32xbf16>
    %68 = vector.extract_strided_slice %66 {offsets = [2, 0, 0], sizes = [2, 8, 32], strides = [1, 1, 1]} : vector<8x8x32xbf16> to vector<2x8x32xbf16>
    %69 = vector.extract_strided_slice %66 {offsets = [4, 0, 0], sizes = [2, 8, 32], strides = [1, 1, 1]} : vector<8x8x32xbf16> to vector<2x8x32xbf16>
    %70 = vector.extract_strided_slice %66 {offsets = [6, 0, 0], sizes = [2, 8, 32], strides = [1, 1, 1]} : vector<8x8x32xbf16> to vector<2x8x32xbf16>
    %71 = tpu.concatenate %67, %68, %69, %70 in 2 : vector<2x8x32xbf16>, vector<2x8x32xbf16>, vector<2x8x32xbf16>, vector<2x8x32xbf16> -> vector<2x8x128xbf16>
    %72 = vector.shape_cast %71 : vector<2x8x128xbf16> to vector<16x128xbf16>
    %cst_30 = arith.constant dense<0.000000e+00> : vector<16x128xf32>
    %73 = tpu.matmul %72, %18, %cst_30 {dimension_numbers = #tpu.dot_dimension_numbers<[1], [0], [0], [1], [0, 0, 1, 1], [], []>} : vector<16x128xbf16>, vector<128x128xbf16>, vector<16x128xf32> -> vector<16x128xf32>
    %74 = vector.broadcast %22 : vector<1x128xf32> to vector<16x128xf32>
    %75 = arith.addf %73, %74 : vector<16x128xf32>
    %76 = arith.addf %4, %75 : vector<16x128xf32>
    %cst_31 = arith.constant dense<0.000000e+00> : vector<16xf32>
    %77 = vector.multi_reduction <add>, %76, %cst_31 [1] : vector<16x128xf32> to vector<16xf32>
    %78 = vector.shape_cast %77 : vector<16xf32> to vector<16x1xf32>
    %cst_32 = arith.constant 1.280000e+02 : f32
    %79 = vector.broadcast %cst_32 : f32 to vector<16x1xf32>
    %80 = arith.divf %78, %79 : vector<16x1xf32>
    %81 = vector.broadcast %80 : vector<16x1xf32> to vector<16x128xf32>
    %82 = arith.subf %76, %81 : vector<16x128xf32>
    %83 = arith.mulf %82, %82 : vector<16x128xf32>
    %cst_33 = arith.constant dense<0.000000e+00> : vector<16xf32>
    %84 = vector.multi_reduction <add>, %83, %cst_33 [1] : vector<16x128xf32> to vector<16xf32>
    %85 = vector.shape_cast %84 : vector<16xf32> to vector<16x1xf32>
    %cst_34 = arith.constant 1.280000e+02 : f32
    %86 = vector.broadcast %cst_34 : f32 to vector<16x1xf32>
    %87 = arith.divf %85, %86 : vector<16x1xf32>
    %88 = vector.broadcast %80 : vector<16x1xf32> to vector<16x128xf32>
    %89 = arith.subf %76, %88 : vector<16x128xf32>
    %cst_35 = arith.constant 9.99999974E-6 : f32
    %90 = vector.broadcast %cst_35 : f32 to vector<16x1xf32>
    %91 = arith.addf %87, %90 : vector<16x1xf32>
    %92 = math.rsqrt %91 : vector<16x1xf32>
    %93 = vector.broadcast %92 : vector<16x1xf32> to vector<16x128xf32>
    %94 = arith.mulf %89, %93 : vector<16x128xf32>
    %95 = vector.broadcast %8 : vector<1x128xf32> to vector<16x128xf32>
    %96 = arith.mulf %94, %95 : vector<16x128xf32>
    %97 = vector.broadcast %10 : vector<1x128xf32> to vector<16x128xf32>
    %98 = arith.addf %96, %97 : vector<16x128xf32>
    %99 = arith.truncf %98 : vector<16x128xf32> to vector<16x128xbf16>
    %c0_36 = arith.constant 0 : index
    %c0_37 = arith.constant 0 : index
    %c0_38 = arith.constant 0 : index
    %100 = vector.load %arg4[%c0_36, %c0_37, %c0_38] : memref<1x128x256xbf16, #tpu.memory_space<vmem>>, vector<1x128x256xbf16>
    %101 = vector.shape_cast %100 : vector<1x128x256xbf16> to vector<128x256xbf16>
    %cst_39 = arith.constant dense<0.000000e+00> : vector<16x256xf32>
    %102 = tpu.matmul %99, %101, %cst_39 {dimension_numbers = #tpu.dot_dimension_numbers<[1], [0], [0], [1], [0, 0, 1, 1], [], []>} : vector<16x128xbf16>, vector<128x256xbf16>, vector<16x256xf32> -> vector<16x256xf32>
    %c0_40 = arith.constant 0 : index
    %c0_41 = arith.constant 0 : index
    %c0_42 = arith.constant 0 : index
    %103 = vector.load %arg5[%c0_40, %c0_41, %c0_42] : memref<1x1x256xf32, #tpu.memory_space<vmem>>, vector<1x1x256xf32>
    %104 = vector.shape_cast %103 : vector<1x1x256xf32> to vector<1x256xf32>
    %105 = vector.broadcast %104 : vector<1x256xf32> to vector<16x256xf32>
    %106 = arith.addf %102, %105 : vector<16x256xf32>
    %cst_43 = arith.constant 0.000000e+00 : f32
    %107 = vector.broadcast %cst_43 : f32 to vector<16x256xf32>
    %108 = arith.maximumf %106, %107 : vector<16x256xf32>
    %109 = arith.truncf %108 : vector<16x256xf32> to vector<16x256xbf16>
    %c0_44 = arith.constant 0 : index
    %c0_45 = arith.constant 0 : index
    %c0_46 = arith.constant 0 : index
    %110 = vector.load %arg6[%c0_44, %c0_45, %c0_46] : memref<1x256x128xbf16, #tpu.memory_space<vmem>>, vector<1x256x128xbf16>
    %111 = vector.shape_cast %110 : vector<1x256x128xbf16> to vector<256x128xbf16>
    %cst_47 = arith.constant dense<0.000000e+00> : vector<16x128xf32>
    %112 = tpu.matmul %109, %111, %cst_47 {dimension_numbers = #tpu.dot_dimension_numbers<[1], [0], [0], [1], [0, 0, 1, 1], [], []>} : vector<16x256xbf16>, vector<256x128xbf16>, vector<16x128xf32> -> vector<16x128xf32>
    %113 = vector.broadcast %6 : vector<1x128xf32> to vector<16x128xf32>
    %114 = arith.addf %112, %113 : vector<16x128xf32>
    %115 = arith.addf %98, %114 : vector<16x128xf32>
    %cst_48 = arith.constant dense<0.000000e+00> : vector<16xf32>
    %116 = vector.multi_reduction <add>, %115, %cst_48 [1] : vector<16x128xf32> to vector<16xf32>
    %117 = vector.shape_cast %116 : vector<16xf32> to vector<16x1xf32>
    %cst_49 = arith.constant 1.280000e+02 : f32
    %118 = vector.broadcast %cst_49 : f32 to vector<16x1xf32>
    %119 = arith.divf %117, %118 : vector<16x1xf32>
    %120 = vector.broadcast %119 : vector<16x1xf32> to vector<16x128xf32>
    %121 = arith.subf %115, %120 : vector<16x128xf32>
    %122 = arith.mulf %121, %121 : vector<16x128xf32>
    %cst_50 = arith.constant dense<0.000000e+00> : vector<16xf32>
    %123 = vector.multi_reduction <add>, %122, %cst_50 [1] : vector<16x128xf32> to vector<16xf32>
    %124 = vector.shape_cast %123 : vector<16xf32> to vector<16x1xf32>
    %cst_51 = arith.constant 1.280000e+02 : f32
    %125 = vector.broadcast %cst_51 : f32 to vector<16x1xf32>
    %126 = arith.divf %124, %125 : vector<16x1xf32>
    %127 = vector.broadcast %119 : vector<16x1xf32> to vector<16x128xf32>
    %128 = arith.subf %115, %127 : vector<16x128xf32>
    %cst_52 = arith.constant 9.99999974E-6 : f32
    %129 = vector.broadcast %cst_52 : f32 to vector<16x1xf32>
    %130 = arith.addf %126, %129 : vector<16x1xf32>
    %131 = math.rsqrt %130 : vector<16x1xf32>
    %132 = vector.broadcast %131 : vector<16x1xf32> to vector<16x128xf32>
    %133 = arith.mulf %128, %132 : vector<16x128xf32>
    %134 = vector.broadcast %12 : vector<1x128xf32> to vector<16x128xf32>
    %135 = arith.mulf %133, %134 : vector<16x128xf32>
    %136 = vector.broadcast %14 : vector<1x128xf32> to vector<16x128xf32>
    %137 = arith.addf %135, %136 : vector<16x128xf32>
    %138 = vector.shape_cast %137 : vector<16x128xf32> to vector<2x8x128xf32>
    %c0_53 = arith.constant 0 : index
    %c0_54 = arith.constant 0 : index
    %c0_55 = arith.constant 0 : index
    %139 = vector.load %arg8[%c0_53, %c0_54, %c0_55] : memref<2x8x128xf32, #tpu.memory_space<vmem>>, vector<2x8x128xf32>
    tpu.vector_store %arg8[%c0_53, %c0_54, %c0_55], %138 {strides = array<i32>} : memref<2x8x128xf32, #tpu.memory_space<vmem>>, vector<2x8x128xf32>,
    return
  }
  func.func @transform_0(%arg0: i32) -> (i32, i32, i32) {
    %c0_i32 = arith.constant 0 : i32
    %c0_i32_0 = arith.constant 0 : i32
    %c0_i32_1 = arith.constant 0 : i32
    %c0_i32_2 = arith.constant 0 : i32
    return %c0_i32, %c0_i32_0, %c0_i32_1 : i32, i32, i32
  }
  func.func @transform_1(%arg0: i32) -> (i32, i32, i32) {
    %c0_i32 = arith.constant 0 : i32
    %c0_i32_0 = arith.constant 0 : i32
    %c0_i32_1 = arith.constant 0 : i32
    return %arg0, %c0_i32, %c0_i32_0 : i32, i32, i32
  }
  func.func @transform_2(%arg0: i32) -> (i32, i32, i32) {
    %c0_i32 = arith.constant 0 : i32
    %c0_i32_0 = arith.constant 0 : i32
    %c0_i32_1 = arith.constant 0 : i32
    return %arg0, %c0_i32, %c0_i32_0 : i32, i32, i32
  }
  func.func @transform_3(%arg0: i32) -> (i32, i32, i32) {
    %c0_i32 = arith.constant 0 : i32
    %c0_i32_0 = arith.constant 0 : i32
    %c0_i32_1 = arith.constant 0 : i32
    return %arg0, %c0_i32, %c0_i32_0 : i32, i32, i32
  }
  func.func @transform_4(%arg0: i32) -> (i32, i32, i32) {
    %c0_i32 = arith.constant 0 : i32
    %c0_i32_0 = arith.constant 0 : i32
    %c0_i32_1 = arith.constant 0 : i32
    return %arg0, %c0_i32, %c0_i32_0 : i32, i32, i32
  }
  func.func @transform_5(%arg0: i32) -> (i32, i32, i32) {
    %c0_i32 = arith.constant 0 : i32
    %c0_i32_0 = arith.constant 0 : i32
    %c0_i32_1 = arith.constant 0 : i32
    return %arg0, %c0_i32, %c0_i32_0 : i32, i32, i32
  }
  func.func @transform_6(%arg0: i32) -> (i32, i32, i32) {
    %c0_i32 = arith.constant 0 : i32
    %c0_i32_0 = arith.constant 0 : i32
    %c0_i32_1 = arith.constant 0 : i32
    return %arg0, %c0_i32, %c0_i32_0 : i32, i32, i32
  }
  func.func @transform_7(%arg0: i32) -> (i32, i32, i32) {
    %c0_i32 = arith.constant 0 : i32
    %c0_i32_0 = arith.constant 0 : i32
    %c0_i32_1 = arith.constant 0 : i32
    %c0_i32_2 = arith.constant 0 : i32
    return %c0_i32, %c0_i32_0, %c0_i32_1 : i32, i32, i32
  }
}

</mosaic_0001>

<bundles_post_ra>
// kernel: tpu_custom_call.1
= control target key start
LH: loop header
LB: loop body
LE: loop exit
PB: predicated region body
PF: predicated region fallthrough
CT: control target
= control target key end

     0   :  { %s3646_s0 = inlined_call_operand.vmem [shape: f32[2,8,128], index: 0, kind: input, shape index: {}]   ;;  %s3647_s1 = inlined_call_operand.hbm [shape: bf16[2,128,512], index: 1, kind: input, shape index: {}]   ;;  %s3648_s2 = inlined_call_operand.vmem [shape: f32[2,1,512], index: 2, kind: input, shape index: {}]   ;;  %s3649_s3 = inlined_call_operand.hbm [shape: bf16[2,128,256], index: 3, kind: input, shape index: {}]   ;;  %s3650_s4 = inlined_call_operand.hbm [shape: f32[2,1,256], index: 4, kind: input, shape index: {}]   ;;  %s3651_s5 = inlined_call_operand.hbm [shape: bf16[2,256,128], index: 5, kind: input, shape index: {}]   ;;  %s3652_s6 = inlined_call_operand.vmem [shape: f32[2,5,128], index: 6, kind: input, shape index: {}]   ;;  %s3653_s7 = inlined_call_operand.hbm [shape: f32[2,8,128], index: 7, kind: output, shape index: {}]  }
   0x1   :  { %3660 = sst [smem:[#allocation18_spill]] %s3647_s1 }
   0x2   :  { %3661 = sst [smem:[#allocation19_spill]] %s3649_s3 }
   0x3   :  { %3662 = sst [smem:[#allocation20_spill]] %s3653_s7 }
   0x4   :  { %12 = vsyncpa [#allocation3], 0 }
   0x5   :  { %14 = vsyncpa [#allocation3 + $0x1], 0 }
   0x6   :  { %15 = vsyncpa [#allocation6], 0 }
   0x7   :  { %17 = vsyncpa [#allocation6 + $0x1], 0 }
   0x8   :  { %18 = vsyncpa [#allocation9], 0 }
   0x9   :  { %20 = vsyncpa [#allocation9 + $0x1], 0 }
   0xa   :  { %21 = vsyncpa [#allocation4], 0  ;;  %s3094_s24 = smov 0   ;;  %s3096_s25 = smov 0  }
   0xb   :  { %s3098_s26 = smov 0   ;;  %s3100_s27 = smov 0  }
   0xc LB: > { %3663 = sst [smem:[#allocation15_spill]] %s3029_s26  ;;  %s3113_s28 = sadd.s32 4294967295, %s3033_s27   ;;  %s3033_s27 = sphi %s3100_s27, %s3677_s27   ;;  %s3029_s26 = sphi %s3098_s26, %s3679_s26   ;;  %s3025_s25 = sphi %s3096_s25, %s3681_s25   ;;  %s3021_s24 = sphi %s3094_s24, %s3680_s24  }
   0xd   : > { %s3116_s29 = sadd.s32 1, %s3033_s27   ;;  %s55_s8 = sadd.s32 1, %s3029_s26 }
   0xe   : > { %3664 = sst [smem:[#allocation16_spill]] %s3116_s29  ;;  %s52_s30 = ssub.s32 %s3033_s27, %s3116_s29 }
   0xf   : > { %p53_p0 = scmp.eq.s32.totalorder %s52_s30, 0  ;;  %p62_p1 = scmp.ne.s32.totalorder %s3029_s26, %s3025_s25 }
  0x10   : > { %p63_p2 = scmp.eq.s32.totalorder %s3033_s27, 0  ;;  %p68_p3 = scmp.ne.s32.totalorder %s3025_s25, %s3021_s24 }
  0x11   : > { %s3126_s9 = scalar_select %p53_p0, %s3029_s26, %s55_s8  }
  0x12   : > { %p64_p4 = por %p63_p2, %p62_p1  ;;  %p69_p5 = scmp.eq.s32.totalorder %s3113_s28, 0 }
  0x13   : > { %3665 = sst [smem:[#allocation17_spill]] %s3126_s9  ;;  %p2681_p6 = scmp.lt.s32.totalorder %s3033_s27, 2 }
  0x14   : > { %p3130_p7 = por %p69_p5, %p68_p3  ;;  %s3135_s11 = sand.u32 1, %s3029_s26  }
  0x15   : > { %p3137_p8 = pnand %p2681_p6, %p64_p4  ;;  %s274_s13 = sand.u32 1, %s3033_s27  }
  0x16   : > { %s3666_s10 = scalar_select %p3130_p7, 1, 0 }
  0x17   : > { %s3655_s14 = sshll.u32 %s3135_s11, 7  ;;  %s3656_s15 = sshll.u32 %s3033_s27, 11 }
  0x18   : > { %s278_s16 = scalar_lea.vmem [#allocation5], %s3655_s14  ;;  %s3668_s3 = sld [smem:[#allocation19_spill]] }
  0x19   : > { %s285_s17 = sshll.u32 %s278_s16, 4  ;;  %s3155_s21 = scalar_lea.sflag [#allocation6], %s274_s13  ;;  %s3153_s17 = int_to_ptr.vmem [resolvable:$true] %s285_s17 }
  0x1a   : > { %p3161_p10 = pneg %p3137_p8 }
  0x1e   : > { %s3151_s20 = scalar_lea.hbm %s3668_s3, %s3656_s15  ;;  %s2856_s8 = scalar_lea.hbm %s3668_s3, 4096 }
  0x1f   : > { %s2851_s22 = scalar_lea.hbm %s3151_s20, 2048  ;;  %p2857_p13 = scmp.lt.s32.totalorder %s3151_s20, %s3668_s3 }
  0x20   : > { %p2852_p9 = scmp.ne.s32.totalorder %s3151_s20, %s2851_s22  ;;  %p2858_p0 = scmp.lt.s32.totalorder %s2856_s8, %s2851_s22 }
  0x22   : > { %p2854_p11 = pnand %p3161_p10, %p2852_p9  ;;  %p2859_p1 = por %p2858_p0, %p2857_p13 }
  0x24   : > { %p2855_p12 = pneg %p2854_p11 }
  0x26   : > { %p2860_p2 = pnand %p2859_p1, %p2855_p12 }
  0x28   : > { %2863 = shalt.err (!%p2860_p2)
}
  0x29   : > { %s2864_s13 = scalar_lea.vmem %s3153_s17, 2048  ;;  %s3035_s19 = smov [#allocation5]  }
  0x2a   : > { %p2865_p3 = scmp.ne.s32.totalorder %s3153_s17, %s2864_s13  ;;  %s2869_s24 = sshll.u32 %s3035_s19, 4  ;;  %s2870_s24 = int_to_ptr.vmem [resolvable:$false] %s2869_s24 }
  0x2b   : > { %s2871_s30 = scalar_lea.vmem %s2870_s24, 4096  ;;  %p2872_p6 = scmp.lt.s32.totalorder %s3153_s17, %s2870_s24 }
  0x2c   : > { %p2867_p4 = pnand %p2865_p3, %p3161_p10  ;;  %p2873_p9 = scmp.lt.s32.totalorder %s2871_s30, %s2864_s13 }
  0x2e   : > { %p2868_p5 = pneg %p2867_p4  ;;  %p2874_p11 = por %p2873_p9, %p2872_p6 }
  0x30   : > { %p2875_p7 = pnand %p2874_p11, %p2868_p5 }
  0x32   : > { %2878 = shalt.err (!%p2875_p7)
}
  0x33   : > { %s3036_s22 = smov 128   ;;  %s3037_s8 = smov 8  }
  0x34   : > { %2674 = dma.hbm_to_vmem [thread:$0]  (!%p3137_p8), %s3151_s20, 2048, %s3153_s17, %s3155_s21, %s3036_s22, %s3036_s22, %s3037_s8  }
  0x35   : > { %p2333_p12 = scmp.ge.s32.totalorder %s3033_s27, 1  ;;  %p340_p13 = scmp.lt.s32.totalorder %s3033_s27, 3 }
  0x36   : > { %s2321_s16 = sshll.u32 %s3135_s11, 8  ;;  %s2438_s13 = sshll.u32 %s3033_s27, 12 }
  0x37   : > { %p3187_p0 = pnand %p2333_p12, %p340_p13  ;;  %s250_s19 = scalar_lea.vmem [#allocation2], %s2321_s16 }
  0x38   : > { %s257_s24 = sshll.u32 %s250_s19, 4  ;;  %s3671_s1 = sld [smem:[#allocation18_spill]]  ;;  %s3197_s24 = int_to_ptr.vmem [resolvable:$true] %s257_s24 }
  0x39   : > { %s3670_s18 = scalar_select %p3187_p0, 1, 0 }
  0x3a   : > { %s247_s17 = scalar_lea.sflag [#allocation3], %s3135_s11 }
  0x3e   : > { %s3195_s15 = scalar_lea.hbm %s3671_s1, %s2438_s13  ;;  %s2884_s16 = scalar_lea.hbm %s3671_s1, 8192 }
  0x3f   : > { %s2879_s20 = scalar_lea.hbm %s3195_s15, 4096  ;;  %p2885_p3 = scmp.lt.s32.totalorder %s3195_s15, %s3671_s1 }
  0x40   : > { %p2880_p7 = scmp.ne.s32.totalorder %s3195_s15, %s2879_s20  ;;  %p2886_p4 = scmp.lt.s32.totalorder %s2884_s16, %s2879_s20 }
  0x42   : > { %p2882_p1 = pnand %p2880_p7, %p3161_p10  ;;  %p2887_p5 = por %p2886_p4, %p2885_p3 }
  0x44   : > { %p2883_p2 = pneg %p2882_p1 }
  0x46   : > { %p2888_p6 = pnand %p2887_p5, %p2883_p2 }
  0x48   : > { %2891 = shalt.err (!%p2888_p6)
}
  0x49   : > { %s2892_s14 = scalar_lea.vmem %s3197_s24, 4096  ;;  %s3038_s13 = smov [#allocation2]  }
  0x4a   : > { %p2893_p9 = scmp.ne.s32.totalorder %s3197_s24, %s2892_s14  ;;  %s2897_s30 = sshll.u32 %s3038_s13, 4  ;;  %s2898_s30 = int_to_ptr.vmem [resolvable:$false] %s2897_s30 }
  0x4b   : > { %s2899_s22 = scalar_lea.vmem %s2898_s30, 8192  ;;  %p2900_p13 = scmp.lt.s32.totalorder %s3197_s24, %s2898_s30 }
  0x4c   : > { %p2895_p11 = pnand %p2893_p9, %p3161_p10  ;;  %p2901_p7 = scmp.lt.s32.totalorder %s2899_s22, %s2892_s14 }
  0x4e   : > { %p2896_p12 = pneg %p2895_p11  ;;  %p2902_p1 = por %p2901_p7, %p2900_p13 }
  0x50   : > { %p2903_p0 = pnand %p2902_p1, %p2896_p12 }
  0x52   : > { %2906 = shalt.err (!%p2903_p0)
}
  0x53   : > { %s3039_s3 = smov 256   ;;  %s3040_s20 = smov 16  }
  0x54   : > { %2671 = dma.hbm_to_vmem [thread:$0]  (!%p3137_p8), %s3195_s15, 4096, %s3197_s24, %s247_s17, %s3039_s3, %s3039_s3, %s3040_s20  }
  0x55   : > { %s2327_s8 = sshll.u32 %s3135_s11, 1  ;;  %s2440_s16 = sshll.u32 %s3033_s27, 5 }
  0x56   : > { %s305_s14 = scalar_lea.hbm %s3650_s4, %s2440_s16  ;;  %s299_s30 = scalar_lea.vmem [#allocation7], %s2327_s8 }
  0x57   : > { %s307_s22 = sshll.u32 %s299_s30, 4  ;;  %s2907_s1 = scalar_lea.hbm %s305_s14, 32  ;;  %s308_s22 = int_to_ptr.vmem [resolvable:$true] %s307_s22 }
  0x58   : > { %p2908_p0 = scmp.ne.s32.totalorder %s305_s14, %s2907_s1  ;;  %s2912_s29 = scalar_lea.hbm %s3650_s4, 64 }
  0x59   : > { %p2913_p4 = scmp.lt.s32.totalorder %s305_s14, %s3650_s4  ;;  %p2914_p5 = scmp.lt.s32.totalorder %s2912_s29, %s2907_s1 }
  0x5a   : > { %p2910_p2 = pnand %p2908_p0, %p3161_p10 }
  0x5b   : > { %p2915_p6 = por %p2914_p5, %p2913_p4 }
  0x5c   : > { %p2911_p3 = pneg %p2910_p2 }
  0x5e   : > { %p2916_p9 = pnand %p2915_p6, %p2911_p3 }
  0x60   : > { %2919 = shalt.err (!%p2916_p9)
}
  0x61   : > { %s2920_s24 = scalar_lea.vmem %s308_s22, 32  ;;  %s3041_s17 = smov [#allocation7]  }
  0x62   : > { %p2921_p11 = scmp.ne.s32.totalorder %s308_s22, %s2920_s24  ;;  %s2925_s3 = sshll.u32 %s3041_s17, 4  ;;  %s2926_s3 = int_to_ptr.vmem [resolvable:$false] %s2925_s3 }
  0x63   : > { %s2927_s20 = scalar_lea.vmem %s2926_s3, 64  ;;  %p2928_p7 = scmp.lt.s32.totalorder %s308_s22, %s2926_s3 }
  0x64   : > { %p2923_p12 = pnand %p2921_p11, %p3161_p10  ;;  %p2929_p1 = scmp.lt.s32.totalorder %s2927_s20, %s2920_s24 }
  0x66   : > { %p2924_p13 = pneg %p2923_p12  ;;  %p2930_p0 = por %p2929_p1, %p2928_p7 }
  0x68   : > { %p2931_p2 = pnand %p2930_p0, %p2924_p13 }
  0x6a   : > { %2934 = shalt.err (!%p2931_p2)
}
  0x6b   : > { %2677 = dma.hbm_to_vmem [thread:$0]  (!%p3137_p8), %s305_s14, 32, %s308_s22, %s3155_s21  }
  0x6c   : > { %s3672_s1 = sshll.u32 %s3033_s27, 11  ;;  %s3673_s9 = sshll.u32 %s3135_s11, 7 }
  0x6d   : > { %s3245_s29 = scalar_lea.hbm %s3651_s5, %s3672_s1  ;;  %s318_s8 = scalar_lea.vmem [#allocation8], %s3673_s9 }
  0x6e   : > { %s325_s16 = sshll.u32 %s318_s8, 4  ;;  %s315_s19 = scalar_lea.sflag [#allocation9], %s3135_s11  ;;  %s3249_s16 = int_to_ptr.vmem [resolvable:$true] %s325_s16 }
  0x6f   : > { %s2935_s13 = scalar_lea.hbm %s3245_s29, 2048  ;;  %s2940_s14 = scalar_lea.hbm %s3651_s5, 4096 }
  0x70   : > { %p2936_p3 = scmp.ne.s32.totalorder %s3245_s29, %s2935_s13  ;;  %p2941_p6 = scmp.lt.s32.totalorder %s3245_s29, %s3651_s5 }
  0x71   : > { %p2942_p9 = scmp.lt.s32.totalorder %s2940_s14, %s2935_s13 }
  0x72   : > { %p2938_p4 = pnand %p2936_p3, %p3161_p10 }
  0x73   : > { %p2943_p11 = por %p2942_p9, %p2941_p6 }
  0x74   : > { %p2939_p5 = pneg %p2938_p4 }
  0x76   : > { %p2944_p12 = pnand %p2943_p11, %p2939_p5 }
  0x78   : > { %2947 = shalt.err (!%p2944_p12)
}
  0x79   : > { %s2948_s15 = scalar_lea.vmem %s3249_s16, 2048  ;;  %s3042_s24 = smov [#allocation8]  }
  0x7a   : > { %p2949_p13 = scmp.ne.s32.totalorder %s3249_s16, %s2948_s15  ;;  %s2953_s17 = sshll.u32 %s3042_s24, 4  ;;  %s2954_s17 = int_to_ptr.vmem [resolvable:$false] %s2953_s17 }
  0x7b   : > { %s2955_s3 = scalar_lea.vmem %s2954_s17, 4096  ;;  %p2956_p0 = scmp.lt.s32.totalorder %s3249_s16, %s2954_s17 }
  0x7c   : > { %p2951_p7 = pnand %p2949_p13, %p3161_p10  ;;  %p2957_p2 = scmp.lt.s32.totalorder %s2955_s3, %s2948_s15 }
  0x7e   : > { %p2952_p1 = pneg %p2951_p7  ;;  %p2958_p3 = por %p2957_p2, %p2956_p0 }
  0x80   : > { %p2959_p4 = pnand %p2958_p3, %p2952_p1 }
  0x82   : > { %2962 = shalt.err (!%p2959_p4)
}
  0x83   : > { %s3043_s20 = smov 64   ;;  %s3044_s1 = smov 4  }
  0x84   : > { %2680 = dma.hbm_to_vmem [thread:$0]  (!%p3137_p8), %s3245_s29, 2048, %s3249_s16, %s315_s19, %s3043_s20, %s3043_s20, %s3044_s1  }
  0x85   : > { %p3674_p10 = scmp.ne.s32.totalorder %s3670_s18, 0 }
  0x86   : > { %s346_s23 = sand.u32 (!%p3674_p10), 1, %s3025_s25   ;;  %p3675_p5 = scmp.ne.s32.totalorder (!%p3674_p10), %s3666_s10, 0 }
  0x87   : > { %344 = sbr.rel (%p3674_p10) target bundleno = 2641 (0xa51), region = 48  ;;  %s2334_s7 = sshll.u32 (!%p3674_p10), %s346_s23, 8 }
  0x88   : > { %s347_s26 = scalar_lea.sflag (!%p3674_p10), [#allocation3], %s346_s23  ;;  %s3277_s9 = scalar_lea.vmem (!%p3674_p10), [#allocation2], %s2334_s7 }
  0x8c   : > { %3004 = dma.done.wait (%p3675_p5), %s347_s26, 4096  }
  0x8d   : > { %3006 = vsyncadd (%p3675_p5), %s347_s26, 4294963200  ;;  %s355_s12 = sand.u32 1, %s3113_s28   ;;  %s2335_s11 = sshll.u32 %s346_s23, 7 }
  0x8e   : > { %s356_s29 = scalar_lea.sflag [#allocation6], %s355_s12  ;;  %s3284_s8 = scalar_lea.vmem [#allocation5], %s2335_s11 }
  0x8f   : > { %3008 = dma.done.wait (%p3675_p5), %s356_s29, 2080  }
  0x90   : > { %3010 = vsyncadd (%p3675_p5), %s356_s29, 4294965216  ;;  %s2336_s18 = sshll.u32 %s346_s23, 1  ;;  %s374_s19 = scalar_lea.sflag [#allocation9], %s346_s23 }
  0x91   : > { %s3290_s16 = scalar_lea.vmem [#allocation7], %s2336_s18  ;;  %s3292_s13 = scalar_lea.vmem [#allocation8], %s2335_s11 }
  0x92   : > { %3012 = dma.done.wait (%p3675_p5), %s374_s19, 2048  }
  0x93   : > { %3014 = vsyncadd (%p3675_p5), %s374_s19, 4294965248  ;;  %p426_p8 = scmp.lt.s32.totalorder %s3113_s28, 1  ;;  %p2340_p6 = scmp.ne.s32.totalorder %s3113_s28, 0 }
  0x95   : > { %s427_s27 = scalar_select %p426_p8, %s3113_s28, 1 }
  0x96   : > { %438 = sbr.rel (%p2340_p6) target bundleno = 157 (0x9d), region = 68 }
  0x97   : > { %s2338_s21 = sshll.u32 %s427_s27, 2  ;;  %s2339_s14 = sshll.u32 %s427_s27, 3 }
  0x98   : > { %s3303_s15 = scalar_lea.vmem %s3648_s2, %s2338_s21  ;;  %s3308_s3 = scalar_lea.vmem %s3652_s6, %s2339_s14 }
  0x9b   : > { %v439_v0 = vld [vmem:[%s3646_s0] sm:$0xff]  ;;  %v440_v1 = vld [vmem:[%s3646_s0 + $0x8] sm:$0xff] }
  0x9c   : > { %441 = vst [vmem:[#allocation10] sm:$0xff] %v439_v0  ;;  %442 = vst [vmem:[#allocation10 + $0x8] sm:$0xff] %v440_v1 }
  0x9d PF: > { %v2731_v2 = vld [vmem:[%s3277_s9 + $0xe4] ss:$16 sps:$4 sm:$0xff]   ;;  %v2733_v3 = vld [vmem:[%s3277_s9 + $0xe0] ss:$16 sps:$4 sm:$0xff]   ;;  %v3045_v4 = vmov 0   ;;  %v3046_v5 = vmov 0.0   ;;  %v502_v31 = vlaneseq }
  0x9e   : > { %677 = vmatprep.mubr.bf16.mxu0 %v3045_v4  ;;  %2520 = vmatprep.subr.bf16.mxu1 %v3046_v5  ;;  %v2734_v6 = vld [vmem:[%s3277_s9 + $0xc4] ss:$16 sps:$4 sm:$0xff]   ;;  %v2736_v7 = vld [vmem:[%s3277_s9 + $0xc0] ss:$16 sps:$4 sm:$0xff]   ;;  %v2755_v13 = vld [vmem:[%s3277_s9 + $0xe8] ss:$16 sps:$4 sm:$0xff]  }
  0x9f   : > { %645 = vmatprep.subr.bf16.mxu0 %v2731_v2  ;;  %v2737_v8 = vld [vmem:[%s3277_s9 + $0xa4] ss:$16 sps:$4 sm:$0xff]   ;;  %v2739_v9 = vld [vmem:[%s3277_s9 + $0xa0] ss:$16 sps:$4 sm:$0xff]   ;;  %2521 = vmatpush3.bf16.msra.mxu1 %v2755_v13  ;;  %v2756_v14 = vld [vmem:[%s3277_s9 + $0xc8] ss:$16 sps:$4 sm:$0xff]  }
  0xa0   : > { %646 = vmatpush1.bf16.msra.mxu0 %v2733_v3  ;;  %v2740_v10 = vld [vmem:[%s3277_s9 + $0x84] ss:$16 sps:$4 sm:$0xff]   ;;  %v2742_v11 = vld [vmem:[%s3277_s9 + $0x80] ss:$16 sps:$4 sm:$0xff]   ;;  %2522 = vmatprep.subr.bf16.mxu1 %v3046_v5  ;;  %v2757_v18 = vld [vmem:[%s3277_s9 + $0xa8] ss:$16 sps:$4 sm:$0xff]  }
  0xa1   : > { %647 = vmatprep.subr.bf16.mxu0 %v2734_v6  ;;  %v2743_v12 = vld [vmem:[%s3277_s9 + $0x64] ss:$16 sps:$4 sm:$0xff]   ;;  %v2745_v15 = vld [vmem:[%s3277_s9 + $0x60] ss:$16 sps:$4 sm:$0xff]   ;;  %v2758_v20 = vld [vmem:[%s3277_s9 + $0x88] ss:$16 sps:$4 sm:$0xff]  }
  0xa2   : > { %v2746_v16 = vld [vmem:[%s3277_s9 + $0x44] ss:$16 sps:$4 sm:$0xff]   ;;  %v2748_v17 = vld [vmem:[%s3277_s9 + $0x40] ss:$16 sps:$4 sm:$0xff]   ;;  %v2759_v23 = vld [vmem:[%s3277_s9 + $0x68] ss:$16 sps:$4 sm:$0xff]  }
  0xa3   : > { %v2749_v19 = vld [vmem:[%s3277_s9 + $0x24] ss:$16 sps:$4 sm:$0xff]   ;;  %2523 = vmatpush3.bf16.msra.mxu1 %v2756_v14  ;;  %v2751_v21 = vld [vmem:[%s3277_s9 + $0x20] ss:$16 sps:$4 sm:$0xff]   ;;  %v2760_v27 = vld [vmem:[%s3277_s9 + $0x48] ss:$16 sps:$4 sm:$0xff]  }
  0xa4   : > { %648 = vmatpush1.bf16.msra.mxu0 %v2736_v7  ;;  %2524 = vmatprep.subr.bf16.mxu1 %v3046_v5  ;;  %v2752_v22 = vld [vmem:[%s3277_s9 + $0x4] ss:$16 sps:$4 sm:$0xff]   ;;  %v2754_v24 = vld [vmem:[%s3277_s9] ss:$16 sps:$4 sm:$0xff]   ;;  %v2761_v29 = vld [vmem:[%s3277_s9 + $0x28] ss:$16 sps:$4 sm:$0xff]  }
  0xa5   : > { %649 = vmatprep.subr.bf16.mxu0 %v2737_v8  ;;  %v3343_v25 = vld [vmem:[#allocation10] sm:$0xff]  ;;  %v3345_v26 = vld [vmem:[#allocation10 + $0x8] sm:$0xff]  ;;  %vm3047_vm0 = vmmov 0   ;;  %v3364_v32 = vshrl.u32 %v502_v31, 7  ;;  %v3368_v34 = vld [vmem:[%s3303_s15] sm:$0x7] }
  0xa6   : > { %v500_v28 = vpack.c.bf16 %v3345_v26, %v3343_v25  ;;  %v2762_v30 = vld [vmem:[%s3277_s9 + $0x8] ss:$16 sps:$4 sm:$0xff]   ;;  %2536 = vmatprep.mubr.msk.bf16.mxu1 %vm3047_vm0, %v3046_v5  ;;  %vm785_vm1 = vcmask 261120   ;;  %s3048_s7 = smov 96   ;;  %s3049_s26 = smov 64   ;;  %vm1254_vm2 = vcmask 1043456  }
  0xa7   : > { %2525 = vmatpush3.bf16.msra.mxu1 %v2757_v18  ;;  %v504_v33 = vsub.s32 0, %v3364_v32  ;;  %v508_v35 = vsub.s32 1, %v3364_v32  ;;  %s3050_s12 = smov 32   ;;  %v512_v0 = vsub.s32 2, %v3364_v32  ;;  %vm1154_vm3 = vcmask 64512   ;;  %p2682_p9 = scmp.eq.s32.totalorder %s3113_s28, 1 }
  0xa8   : > { %650 = vmatpush1.bf16.msra.mxu0 %v2739_v9  ;;  %2526 = vmatprep.subr.bf16.mxu1 %v3046_v5  ;;  %vm1652_vm4 = vcmask 523264   ;;  %vm1657_vm5 = vcmask 785408  }
  0xa9   : > { %651 = vmatprep.subr.bf16.mxu0 %v2740_v10  ;;  %v505_v36 = vrot.slane %v3368_v34, %v504_v33  ;;  %v509_v37 = vrot.slane %v3368_v34, %v508_v35  ;;  %v513_v7 = vrot.slane %v3368_v34, %v512_v0 }
  0xab   : > { %2527 = vmatpush3.bf16.msra.mxu1 %v2758_v20 }
  0xac   : > { %652 = vmatpush1.bf16.msra.mxu0 %v2742_v11  ;;  %2528 = vmatprep.subr.bf16.mxu1 %v3046_v5 }
  0xad   : > { %653 = vmatprep.subr.bf16.mxu0 %v2743_v12 }
  0xaf   : > { %2529 = vmatpush3.bf16.msra.mxu1 %v2759_v23 }
  0xb0   : > { %654 = vmatpush1.bf16.msra.mxu0 %v2745_v15  ;;  %2530 = vmatprep.subr.bf16.mxu1 %v3046_v5 }
  0xb1   : > { %655 = vmatprep.subr.bf16.mxu0 %v2746_v16 }
  0xb3   : > { %2531 = vmatpush3.bf16.msra.mxu1 %v2760_v27 }
  0xb4   : > { %656 = vmatpush1.bf16.msra.mxu0 %v2748_v17  ;;  %2532 = vmatprep.subr.bf16.mxu1 %v3046_v5 }
  0xb5   : > { %657 = vmatprep.subr.bf16.mxu0 %v2749_v19 }
  0xb7   : > { %2533 = vmatpush3.bf16.msra.mxu1 %v2761_v29 }
  0xb8   : > { %658 = vmatpush1.bf16.msra.mxu0 %v2751_v21  ;;  %2534 = vmatprep.subr.bf16.mxu1 %v3046_v5 }
  0xb9   : > { %659 = vmatprep.subr.bf16.mxu0 %v2752_v22 }
  0xbb   : > { %2535 = vmatpush3.bf16.msra.mxu1 %v2762_v30 }
  0xbc   : > { %660 = vmatpush1.bf16.msra.mxu0 %v2754_v24  ;;  %2540 = vmatprep.subr.bf16.mxu1 %v3046_v5 }
  0xbd   : > { %2564 = vmatprep.subr.bf16.mxu0 %v3046_v5 }
  0xbe   : > { %2537 = vmatmul.mubr.bf16.vlgmr.msra.gmra.mxu1 %v500_v28 }
  0xbf   : > { %678 = vmatmul.mubr.bf16.vlgmr.msra.gmra.mxu0 %v500_v28  ;;  %2542 = vmatprep.mubr.msk.bf16.mxu1 %vm3047_vm0, %v3046_v5 }
  0xc0   : > { %2566 = vmatprep.mubr.msk.bf16.mxu0 %vm3047_vm0, %v3046_v5 }
 0x17e   : > { %v722_v54 = vpop.f32.mrf.mxu1 }
 0x17f   : > { %v679_v38 = vpop.f32.mrf.mxu0  ;;  %v723_v10 = vadd.f32 %v722_v54, %v513_v7 }
 0x180   : > { %v680_v39 = vadd.f32 %v679_v38, %v505_v36  ;;  %v2538_v55 = vpop.f32.mrf.mxu1 }
 0x181   : > { %v681_v40 = vpop.f32.mrf.mxu0  ;;  %v3419_v13 = vpack.c.bf16 %v723_v10, %v723_v10 }
 0x182   : > { %v682_v41 = vadd.f32 %v681_v40, %v509_v37  ;;  %v729_v43 = vmul.f32 0.17677669, %v680_v39  ;;  %v725_v56 = vpop.f32.mrf.mxu1 }
 0x183   : > { %v683_v42 = vpop.f32.mrf.mxu0  ;;  %v726_v15 = vadd.f32 %v725_v56, %v513_v7  ;;  %v1256_v17 = vsel %vm1254_vm2, %v3419_v13, 0 }
 0x184   : > { %v2444_v44 = vpack.c.bf16 %v682_v41, %v682_v41  ;;  %v684_v45 = vadd.f32 %v683_v42, %v505_v36  ;;  %v2442_v49 = vpack.c.bf16 %v729_v43, %v729_v43  ;;  %v2539_v57 = vpop.f32.mrf.mxu1 }
 0x185   : > { %v685_v46 = vpop.f32.mrf.mxu0  ;;  %v3429_v19 = vpack.c.bf16 %v726_v15, %v726_v15 }
 0x186   : > { %v686_v47 = vadd.f32 %v685_v46, %v509_v37  ;;  %755 = vrot.lane.b32.xlu0 %v2444_v44, %s3048_s7  ;;  %v790_v48 = vsel %vm785_vm1, %v2444_v44, 0  ;;  %v730_v50 = vmul.f32 0.17677669, %v684_v45 }
 0x187   : > { %2541 = vmatpush3.bf16.xpose.msra.mxu1 %v790_v48  ;;  %v1302_v20 = vsel %vm1254_vm2, %v3429_v19, 0 }
 0x188   : > { %v2445_v51 = vpack.c.bf16 %v686_v47, %v686_v47  ;;  %2546 = vmatprep.subr.bf16.mxu1 %v3046_v5  ;;  %v2443_v52 = vpack.c.bf16 %v730_v50, %v730_v50 }
 0x18a   : > { %757 = vrot.lane.b32.xlu1 %v2445_v51, %s3048_s7  ;;  %737 = vrot.lane.b32.xlu0 %v2442_v49, %s3048_s7  ;;  %v836_v53 = vsel %vm785_vm1, %v2445_v51, 0 }
 0x18e   : > { %739 = vrot.lane.b32.xlu1 %v2443_v52, %s3048_s7  ;;  %759 = vrot.lane.b32.xlu0 %v2444_v44, %s3049_s26 }
 0x18f   : > { %2543 = vmatmul.mubr.msk.bf16.vlgmr.msra.gmra.mxu1 %vm785_vm1, %v2442_v49 }
 0x190   : > { %2547 = vmatpush3.bf16.xpose.msra.mxu1 %v836_v53  ;;  %2548 = vmatprep.mubr.msk.bf16.mxu1 %vm3047_vm0, %v3046_v5 }
 0x191   : > { %2552 = vmatprep.subr.bf16.mxu1 %v3046_v5 }
 0x192   : > { %761 = vrot.lane.b32.xlu1 %v2445_v51, %s3049_s26  ;;  %741 = vrot.lane.b32.xlu0 %v2442_v49, %s3049_s26 }
 0x196   : > { %743 = vrot.lane.b32.xlu1 %v2443_v52, %s3049_s26  ;;  %763 = vrot.lane.b32.xlu0 %v2444_v44, %s3050_s12 }
 0x197   : > { %2549 = vmatmul.mubr.msk.bf16.vlgmr.msra.gmra.mxu1 %vm785_vm1, %v2443_v52 }
 0x198   : > { %2554 = vmatprep.mubr.msk.bf16.mxu1 %vm3047_vm0, %v3046_v5 }
 0x19a   : > { %765 = vrot.lane.b32.xlu1 %v2445_v51, %s3050_s12  ;;  %745 = vrot.lane.b32.xlu0 %v2442_v49, %s3050_s12 }
 0x19e   : > { %747 = vrot.lane.b32.xlu1 %v2443_v52, %s3050_s12 }
 0x1f8   : > { %v756_v58 = vpop.permute.xlu0 %755 }
 0x1f9   : > { %v882_v59 = vsel %vm785_vm1, %v756_v58, 0 }
 0x1fa   : > { %2553 = vmatpush3.bf16.xpose.msra.mxu1 %v882_v59 }
 0x1fb   : > { %2558 = vmatprep.subr.bf16.mxu1 %v3046_v5 }
 0x1fc   : > { %v758_v60 = vpop.permute.xlu1 %757  ;;  %v738_v61 = vpop.permute.xlu0 %737 }
 0x1fd   : > { %v928_v1 = vsel %vm785_vm1, %v758_v60, 0 }
 0x200   : > { %v740_v62 = vpop.permute.xlu1 %739  ;;  %v760_v63 = vpop.permute.xlu0 %759 }
 0x201   : > { %v974_v2 = vsel %vm785_vm1, %v760_v63, 0  ;;  %2555 = vmatmul.mubr.msk.bf16.vlgmr.msra.gmra.mxu1 %vm785_vm1, %v738_v61 }
 0x202   : > { %2559 = vmatpush3.bf16.xpose.msra.mxu1 %v928_v1  ;;  %2565 = vmatpush3.bf16.xpose.msra.mxu0 %v974_v2 }
 0x203   : > { %2560 = vmatprep.mubr.msk.bf16.mxu1 %vm3047_vm0, %v3046_v5  ;;  %2570 = vmatprep.subr.bf16.mxu1 %v3046_v5 }
 0x204   : > { %v762_v3 = vpop.permute.xlu1 %761  ;;  %v742_v6 = vpop.permute.xlu0 %741  ;;  %2576 = vmatprep.subr.bf16.mxu0 %v3046_v5 }
 0x205   : > { %v1020_v11 = vsel %vm785_vm1, %v762_v3, 0 }
 0x208   : > { %v744_v8 = vpop.permute.xlu1 %743  ;;  %v764_v9 = vpop.permute.xlu0 %763 }
 0x209   : > { %v1066_v12 = vsel %vm785_vm1, %v764_v9, 0  ;;  %2561 = vmatmul.mubr.msk.bf16.vlgmr.msra.gmra.mxu1 %vm785_vm1, %v740_v62  ;;  %2567 = vmatmul.mubr.msk.bf16.vlgmr.msra.gmra.mxu0 %vm785_vm1, %v742_v6 }
 0x20a   : > { %2571 = vmatpush3.bf16.xpose.msra.mxu1 %v1020_v11  ;;  %2577 = vmatpush3.bf16.xpose.msra.mxu0 %v1066_v12 }
 0x20b   : > { %2572 = vmatprep.mubr.msk.bf16.mxu1 %vm3047_vm0, %v3046_v5  ;;  %2578 = vmatprep.mubr.msk.bf16.mxu0 %vm3047_vm0, %v3046_v5 }
 0x20c   : > { %2582 = vmatprep.subr.bf16.mxu1 %v3046_v5  ;;  %2588 = vmatprep.subr.bf16.mxu0 %v3046_v5  ;;  %v766_v14 = vpop.permute.xlu1 %765  ;;  %v746_v16 = vpop.permute.xlu0 %745 }
 0x20d   : > { %v1112_v18 = vsel %vm785_vm1, %v766_v14, 0 }
 0x210   : > { %v748_v21 = vpop.permute.xlu1 %747 }
 0x211   : > { %2573 = vmatmul.mubr.msk.bf16.vlgmr.msra.gmra.mxu1 %vm785_vm1, %v744_v8  ;;  %2579 = vmatmul.mubr.msk.bf16.vlgmr.msra.gmra.mxu0 %vm785_vm1, %v746_v16 }
 0x212   : > { %2583 = vmatpush3.bf16.xpose.msra.mxu1 %v1112_v18  ;;  %2584 = vmatprep.mubr.msk.bf16.mxu1 %vm3047_vm0, %v3046_v5 }
 0x213   : > { %2594 = vmatprep.subr.bf16.mxu1 %v3046_v5  ;;  %2589 = vmatpush3.bf16.msra.mxu0 %v1256_v17 }
 0x214   : > { %2590 = vmatprep.mubr.msk.bf16.mxu0 %vm3047_vm0, %v3046_v5  ;;  %2600 = vmatprep.subr.bf16.mxu0 %v3046_v5 }
 0x219   : > { %2585 = vmatmul.mubr.msk.bf16.vlgmr.msra.gmra.mxu1 %vm785_vm1, %v748_v21 }
 0x21a   : > { %2595 = vmatpush3.bf16.msra.mxu1 %v1302_v20  ;;  %2596 = vmatprep.mubr.msk.bf16.mxu1 %vm3047_vm0, %v3046_v5 }
 0x21b   : > { %2606 = vmatprep.subr.bf16.mxu1 %v3046_v5 }
 0x24f   : > { %v826_v22 = vpop.f32.mrf.mxu1 }
 0x250   : > { %v1155_v23 = vsel %vm1154_vm3, %v826_v22, -inf }
 0x251   : > { %1156 = vmax.xlane.f32.xlu0 %v1155_v23  ;;  %v2544_v24 = vpop.f32.mrf.mxu1 }
 0x253   : > { %v829_v27 = vpop.f32.mrf.mxu1 }
 0x255   : > { %v2545_v28 = vpop.f32.mrf.mxu1 }
 0x257   : > { %v872_v29 = vpop.f32.mrf.mxu1 }
 0x258   : > { %v1158_v30 = vsel %vm1154_vm3, %v872_v29, -inf }
 0x259   : > { %1159 = vmax.xlane.f32.xlu1 %v1158_v30  ;;  %v2550_v31 = vpop.f32.mrf.mxu1 }
 0x25b   : > { %v875_v34 = vpop.f32.mrf.mxu1 }
 0x25d   : > { %v2551_v36 = vpop.f32.mrf.mxu1 }
 0x2c1   : > { %v918_v37 = vpop.f32.mrf.mxu1 }
 0x2c2   : > { %v1161_v38 = vsel %vm1154_vm3, %v918_v37, -inf }
 0x2c3   : > { %1162 = vmax.xlane.f32.xlu0 %v1161_v38  ;;  %v2556_v39 = vpop.f32.mrf.mxu1 }
 0x2c5   : > { %v921_v40 = vpop.f32.mrf.mxu1 }
 0x2c7   : > { %v2557_v41 = vpop.f32.mrf.mxu1 }
 0x2c9   : > { %v964_v42 = vpop.f32.mrf.mxu1  ;;  %v1010_v43 = vpop.f32.mrf.mxu0 }
 0x2ca   : > { %v1167_v44 = vsel %vm1154_vm3, %v1010_v43, -inf  ;;  %v1164_v45 = vsel %vm1154_vm3, %v964_v42, -inf }
 0x2cb   : > { %v2568_v46 = vpop.f32.mrf.mxu0  ;;  %1168 = vmax.xlane.f32.xlu1 %v1167_v44  ;;  %1165 = vmax.xlane.f32.xlu0 %v1164_v45  ;;  %v2562_v47 = vpop.f32.mrf.mxu1 }
 0x2cd   : > { %v967_v48 = vpop.f32.mrf.mxu1  ;;  %v1013_v49 = vpop.f32.mrf.mxu0 }
 0x2cf   : > { %v2563_v50 = vpop.f32.mrf.mxu1  ;;  %v2569_v51 = vpop.f32.mrf.mxu0 }
 0x2d1   : > { %v3446_v52 = vpop.f32.mrf.mxu1  ;;  %v3448_v53 = vpop.f32.mrf.mxu0 }
 0x2d2   : > { %v1173_v54 = vsel %vm1154_vm3, %v3448_v53, -inf  ;;  %v1170_v55 = vsel %vm1154_vm3, %v3446_v52, -inf }
 0x2d3   : > { %v2580_v56 = vpop.f32.mrf.mxu0  ;;  %1174 = vmax.xlane.f32.xlu1 %v1173_v54  ;;  %1171 = vmax.xlane.f32.xlu0 %v1170_v55  ;;  %v2574_v57 = vpop.f32.mrf.mxu1 }
 0x2d5   : > { %v1059_v58 = vpop.f32.mrf.mxu1  ;;  %v1105_v59 = vpop.f32.mrf.mxu0 }
 0x2d7   : > { %v2575_v60 = vpop.f32.mrf.mxu1  ;;  %v2581_v61 = vpop.f32.mrf.mxu0 }
 0x2d9   : > { %v1148_v62 = vpop.f32.mrf.mxu1 }
 0x2da   : > { %v1176_v63 = vsel %vm1154_vm3, %v1148_v62, -inf  ;;  %v1157_v8 = vpop.xlane.xlu0 %1156 }
 0x2db   : > { %1177 = vmax.xlane.f32.xlu0 %v1176_v63  ;;  %v2586_v0 = vpop.f32.mrf.mxu1  ;;  %v1179_v9 = vsub.f32 %v826_v22, %v1157_v8 }
 0x2dd   : > { %v1151_v1 = vpop.f32.mrf.mxu1  ;;  %v1187_v10 = vmul.f32 1.442695, %v1179_v9 }
 0x2df   : > { %v2587_v2 = vpop.f32.mrf.mxu1 }
 0x2e2   : > { %v1160_v3 = vpop.xlane.xlu1 %1159 }
 0x2e3   : > { %v1180_v6 = vsub.f32 %v872_v29, %v1160_v3 }
 0x2e4   : > { %773 = vrot.lane.b32.xlu1 %v3419_v13, %s3048_s7 }
 0x2e5   : > { %v1189_v7 = vmul.f32 1.442695, %v1180_v6 }
 0x2e7   : > { %2811 = vpow2.f32 %v1189_v7 }
 0x2e8   : > { %2813 = vpow2.f32 %v1187_v10 }
 0x2f4   : > { %v2812_v11 = vpop.eup %2811 }
 0x2f5   : > { %v1206_v12 = vsel %vm1154_vm3, %v2812_v11, 0.0  ;;  %v2814_v14 = vpop.eup %2813 }
 0x2f6   : > { %1207 = vadd.xlane.f32.xlu0 %v1206_v12  ;;  %v1203_v15 = vsel %vm1154_vm3, %v2814_v14, 0.0 }
 0x308   : > { %1204 = vadd.xlane.f32.xlu1 %v1203_v15 }
 0x34c   : > { %v1163_v16 = vpop.xlane.xlu0 %1162 }
 0x34d   : > { %v1181_v17 = vsub.f32 %v918_v37, %v1163_v16 }
 0x34f   : > { %v1191_v18 = vmul.f32 1.442695, %v1181_v17 }
 0x351   : > { %2815 = vpow2.f32 %v1191_v18 }
 0x354   : > { %v1169_v20 = vpop.xlane.xlu1 %1168  ;;  %v1166_v21 = vpop.xlane.xlu0 %1165 }
 0x355   : > { %v1183_v23 = vsub.f32 %v1010_v43, %v1169_v20  ;;  %v1182_v24 = vsub.f32 %v964_v42, %v1166_v21 }
 0x357   : > { %v1195_v27 = vmul.f32 1.442695, %v1183_v23  ;;  %v1193_v22 = vmul.f32 1.442695, %v1182_v24 }
 0x359   : > { %2817 = vpow2.f32 %v1195_v27 }
 0x35a   : > { %2819 = vpow2.f32 %v1193_v22 }
 0x35c   : > { %v1172_v37 = vpop.xlane.xlu0 %1171  ;;  %v1175_v40 = vpop.xlane.xlu1 %1174 }
 0x35d   : > { %v1184_v41 = vsub.f32 %v3446_v52, %v1172_v37  ;;  %v1185_v42 = vsub.f32 %v3448_v53, %v1175_v40 }
 0x35e   : > { %v3459_v28 = vpop.eup %2815 }
 0x35f   : > { %v1209_v29 = vsel %vm1154_vm3, %v3459_v28, 0.0  ;;  %v1197_v43 = vmul.f32 1.442695, %v1184_v41  ;;  %v1199_v45 = vmul.f32 1.442695, %v1185_v42 }
 0x360   : > { %1210 = vadd.xlane.f32.xlu1 %v1209_v29  ;;  %v774_v47 = vpop.permute.xlu1 %773 }
 0x361   : > { %v1348_v61 = vsel %vm1254_vm2, %v774_v47, 0  ;;  %v2763_v47 = vld [vmem:[%s3277_s9 + $0xec] ss:$16 sps:$4 sm:$0xff]  }
 0x364   : > { %v1178_v38 = vpop.xlane.xlu0 %1177 }
 0x365   : > { %v1186_v44 = vsub.f32 %v1148_v62, %v1178_v38 }
 0x366   : > { %v3463_v30 = vpop.eup %2817 }
 0x367   : > { %v3465_v31 = vpop.eup %2819  ;;  %v1215_v34 = vsel %vm1154_vm3, %v3463_v30, 0.0  ;;  %v1201_v48 = vmul.f32 1.442695, %v1186_v44 }
 0x368   : > { %1216 = vadd.xlane.f32.xlu1 %v1215_v34  ;;  %v1212_v36 = vsel %vm1154_vm3, %v3465_v31, 0.0 }
 0x369   : > { %1213 = vadd.xlane.f32.xlu0 %v1212_v36 }
 0x379   : > { %777 = vrot.lane.b32.xlu1 %v3419_v13, %s3049_s26 }
 0x37d   : > { %779 = vrot.lane.b32.xlu1 %v3429_v19, %s3049_s26 }
 0x37f   : > { %775 = vrot.lane.b32.xlu0 %v3429_v19, %s3048_s7  ;;  %v1208_v39 = vpop.xlane.xlu0 %1207 }
 0x380   : > { %2821 = vrcp.f32 %v1208_v39 }
 0x381   : > { %2823 = vpow2.f32 %v1197_v43 }
 0x382   : > { %2825 = vpow2.f32 %v1199_v45 }
 0x383   : > { %2827 = vpow2.f32 %v1201_v48 }
 0x38d   : > { %v2822_v46 = vpop.eup %2821 }
 0x38e   : > { %v1236_v49 = vmul.f32 %v2822_v46, %v2812_v11  ;;  %v3482_v52 = vpop.eup %2823 }
 0x38f   : > { %v3484_v53 = vpop.eup %2825  ;;  %v1218_v54 = vsel %vm1154_vm3, %v3482_v52, 0.0 }
 0x390   : > { %v1244_v50 = vpack.c.bf16 %v1236_v49, %v1236_v49  ;;  %v3488_v55 = vpop.eup %2827  ;;  %v1221_v57 = vsel %vm1154_vm3, %v3484_v53, 0.0 }
 0x391   : > { %v1205_v51 = vpop.xlane.xlu1 %1204  ;;  %v1224_v59 = vsel %vm1154_vm3, %v3488_v55, 0.0 }
 0x392   : > { %2829 = vrcp.f32 %v1205_v51  ;;  %2597 = vmatmul.mubr.msk.bf16.vlgmr.msra.gmra.mxu1 %vm1154_vm3, %v1244_v50  ;;  %v2764_v50 = vld [vmem:[%s3277_s9 + $0xcc] ss:$16 sps:$4 sm:$0xff]  }
 0x393   : > { %2608 = vmatprep.mubr.msk.bf16.mxu1 %vm3047_vm0, %v3046_v5 }
 0x39e   : > { %1219 = vadd.xlane.f32.xlu0 %v1218_v54 }
 0x39f   : > { %v2830_v56 = vpop.eup %2829 }
 0x3a0   : > { %v1235_v58 = vmul.f32 %v2830_v56, %v2814_v14 }
 0x3a1   : > { %1222 = vadd.xlane.f32.xlu1 %v1221_v57  ;;  %v2766_v57 = vld [vmem:[%s3277_s9 + $0x8c] ss:$16 sps:$4 sm:$0xff]  }
 0x3a2   : > { %1225 = vadd.xlane.f32.xlu0 %v1224_v59  ;;  %v1243_v60 = vpack.c.bf16 %v1235_v58, %v1235_v58 }
 0x3a4   : > { %2591 = vmatmul.mubr.msk.bf16.vlgmr.msra.gmra.mxu0 %vm1154_vm3, %v1243_v60 }
 0x3a5   : > { %2601 = vmatpush3.bf16.msra.mxu0 %v1348_v61  ;;  %2602 = vmatprep.mubr.msk.bf16.mxu0 %vm3047_vm0, %v3046_v5 }
 0x3a6   : > { %2612 = vmatprep.subr.bf16.mxu0 %v3046_v5 }
 0x3b2   : > { %783 = vrot.lane.b32.xlu1 %v3429_v19, %s3050_s12 }
 0x3b8   : > { %781 = vrot.lane.b32.xlu0 %v3419_v13, %s3050_s12 }
 0x3e9   : > { %v1211_v62 = vpop.xlane.xlu1 %1210 }
 0x3ea   : > { %2831 = vrcp.f32 %v1211_v62 }
 0x3f1   : > { %v1217_v63 = vpop.xlane.xlu1 %1216 }
 0x3f2   : > { %2833 = vrcp.f32 %v1217_v63  ;;  %v1214_v0 = vpop.xlane.xlu0 %1213  ;;  %v2767_v63 = vld [vmem:[%s3277_s9 + $0x6c] ss:$16 sps:$4 sm:$0xff]  }
 0x3f3   : > { %2835 = vrcp.f32 %v1214_v0 }
 0x3f5   : > { %v778_v7 = vpop.permute.xlu1 %777 }
 0x3f6   : > { %v776_v1 = vpop.permute.xlu0 %775  ;;  %v1440_v8 = vsel %vm1254_vm2, %v778_v7, 0 }
 0x3f7   : > { %v2832_v2 = vpop.eup %2831  ;;  %v1394_v3 = vsel %vm1254_vm2, %v776_v1, 0 }
 0x3f8   : > { %2607 = vmatpush3.bf16.msra.mxu1 %v1394_v3  ;;  %v1237_v6 = vmul.f32 %v2832_v2, %v3459_v28  ;;  %v2768_v2 = vld [vmem:[%s3277_s9 + $0x4c] ss:$16 sps:$4 sm:$0xff]  }
 0x3f9   : > { %2618 = vmatprep.subr.bf16.mxu1 %v3046_v5  ;;  %v780_v12 = vpop.permute.xlu1 %779  ;;  %v2769_v3 = vld [vmem:[%s3277_s9 + $0x2c] ss:$16 sps:$4 sm:$0xff]  }
 0x3fa   : > { %v1245_v19 = vpack.c.bf16 %v1237_v6, %v1237_v6  ;;  %v1486_v16 = vsel %vm1254_vm2, %v780_v12, 0  ;;  %v2770_v6 = vld [vmem:[%s3277_s9 + $0xc] ss:$16 sps:$4 sm:$0xff]  }
 0x3fc   : > { %2603 = vmatmul.mubr.msk.bf16.vlgmr.msra.gmra.mxu0 %vm1154_vm3, %v1245_v19 }
 0x3fd   : > { %2613 = vmatpush3.bf16.msra.mxu0 %v1440_v8  ;;  %2614 = vmatprep.mubr.msk.bf16.mxu0 %vm3047_vm0, %v3046_v5 }
 0x3fe   : > { %2624 = vmatprep.subr.bf16.mxu0 %v3046_v5 }
 0x3ff   : > { %v2834_v13 = vpop.eup %2833 }
 0x400   : > { %v2836_v9 = vpop.eup %2835  ;;  %v1239_v10 = vmul.f32 %v2834_v13, %v3463_v30 }
 0x401   : > { %v1238_v11 = vmul.f32 %v2836_v9, %v3465_v31 }
 0x402   : > { %v1247_v14 = vpack.c.bf16 %v1239_v10, %v1239_v10 }
 0x403   : > { %v1246_v15 = vpack.c.bf16 %v1238_v11, %v1238_v11 }
 0x404   : > { %2615 = vmatmul.mubr.msk.bf16.vlgmr.msra.gmra.mxu0 %vm1154_vm3, %v1247_v14 }
 0x405   : > { %2609 = vmatmul.mubr.msk.bf16.vlgmr.msra.gmra.mxu1 %vm1154_vm3, %v1246_v15  ;;  %2626 = vmatprep.mubr.msk.bf16.mxu0 %vm3047_vm0, %v3046_v5 }
 0x406   : > { %2619 = vmatpush3.bf16.msra.mxu1 %v1486_v16  ;;  %2620 = vmatprep.mubr.msk.bf16.mxu1 %vm3047_vm0, %v3046_v5 }
 0x407   : > { %2630 = vmatprep.subr.bf16.mxu1 %v3046_v5 }
 0x427   : > { %v1220_v17 = vpop.xlane.xlu0 %1219 }
 0x428   : > { %2837 = vrcp.f32 %v1220_v17 }
 0x42a   : > { %v1223_v18 = vpop.xlane.xlu1 %1222 }
 0x42b   : > { %2839 = vrcp.f32 %v1223_v18  ;;  %v1226_v20 = vpop.xlane.xlu0 %1225 }
 0x42c   : > { %2841 = vrcp.f32 %v1226_v20 }
 0x42e   : > { %v784_v22 = vpop.permute.xlu1 %783 }
 0x42f   : > { %v782_v21 = vpop.permute.xlu0 %781  ;;  %v1578_v34 = vsel %vm1254_vm2, %v784_v22, 0 }
 0x430   : > { %v1532_v23 = vsel %vm1254_vm2, %v782_v21, 0 }
 0x431   : > { %2625 = vmatpush3.bf16.msra.mxu0 %v1532_v23 }
 0x432   : > { %2636 = vmatprep.subr.bf16.mxu0 %v3046_v5 }
 0x435   : > { %v2838_v24 = vpop.eup %2837 }
 0x436   : > { %v1240_v27 = vmul.f32 %v2838_v24, %v3482_v52  ;;  %v2765_v52 = vld [vmem:[%s3277_s9 + $0xac] ss:$16 sps:$4 sm:$0xff]   ;;  %s3051_s9 = smov [#allocation10]  }
 0x437   : > { %s2175_s11 = sshll.u32 %s3051_s9, 4  ;;  %s2176_s11 = int_to_ptr.vmem [resolvable:$true] %s2175_s11 }
 0x438   : > { %v2840_v28 = vpop.eup %2839  ;;  %v1248_v29 = vpack.c.bf16 %v1240_v27, %v1240_v27  ;;  %s2963_s29 = scalar_lea.vmem %s2176_s11, 256  ;;  %p2970_p7 = scmp.lt.s32.totalorder %s2176_s11, %s2176_s11 }
 0x439   : > { %v2842_v30 = vpop.eup %2841  ;;  %v1241_v31 = vmul.f32 %v2840_v28, %v3484_v53  ;;  %p2964_p11 = scmp.ne.s32.totalorder %s2176_s11, %s2963_s29  ;;  %p2971_p1 = scmp.lt.s32.totalorder %s2963_s29, %s2963_s29 }
 0x43a   : > { %2621 = vmatmul.mubr.msk.bf16.vlgmr.msra.gmra.mxu1 %vm1154_vm3, %v1248_v29  ;;  %v1242_v37 = vmul.f32 %v2842_v30, %v3488_v55 }
 0x43b   : > { %2631 = vmatpush3.bf16.msra.mxu1 %v1578_v34  ;;  %v1249_v36 = vpack.c.bf16 %v1241_v31, %v1241_v31  ;;  %2632 = vmatprep.mubr.msk.bf16.mxu1 %vm3047_vm0, %v3046_v5  ;;  %p2965_p12 = pnand %p2964_p11, %p2682_p9  ;;  %p2972_p0 = por %p2971_p1, %p2970_p7 }
 0x43c   : > { %v1250_v38 = vpack.c.bf16 %v1242_v37, %v1242_v37 }
 0x43d   : > { %2627 = vmatmul.mubr.msk.bf16.vlgmr.msra.gmra.mxu0 %vm1154_vm3, %v1249_v36  ;;  %p2966_p13 = pneg %p2965_p12 }
 0x43e   : > { %2652 = vmatprep.mubr.msk.bf16.mxu0 %vm3047_vm0, %v3046_v5  ;;  %2637 = vmatpush3.bf16.msra.mxu0 %v2763_v47 }
 0x43f   : > { %2638 = vmatprep.subr.bf16.mxu0 %v3046_v5  ;;  %p2973_p2 = pnand %p2972_p0, %p2966_p13 }
 0x442   : > { %2633 = vmatmul.mubr.msk.bf16.vlgmr.msra.gmra.mxu1 %vm1154_vm3, %v1250_v38  ;;  %2639 = vmatpush3.bf16.msra.mxu0 %v2764_v50  ;;  %v2771_v50 = vld [vmem:[%s3284_s8 + $0x70] ss:$8 sps:$4 sm:$0xff]  }
 0x443   : > { %1941 = vmatprep.mubr.bf16.mxu1 %v3045_v4  ;;  %2640 = vmatprep.subr.bf16.mxu0 %v3046_v5 }
 0x446   : > { %2641 = vmatpush3.bf16.msra.mxu0 %v2765_v52 }
 0x447   : > { %2642 = vmatprep.subr.bf16.mxu0 %v3046_v5 }
 0x44a   : > { %2643 = vmatpush3.bf16.msra.mxu0 %v2766_v57  ;;  %v2776_v57 = vld [vmem:[%s3284_s8 + $0x64] ss:$8 sps:$4 sm:$0xff]  }
 0x44b   : > { %2644 = vmatprep.subr.bf16.mxu0 %v3046_v5 }
 0x44e   : > { %2645 = vmatpush3.bf16.msra.mxu0 %v2767_v63  ;;  %v2785_v63 = vld [vmem:[%s3284_s8 + $0x34] ss:$8 sps:$4 sm:$0xff]  }
 0x44f   : > { %2646 = vmatprep.subr.bf16.mxu0 %v3046_v5 }
 0x452   : > { %v3535_v39 = vpop.f32.mrf.mxu1  ;;  %2647 = vmatpush3.bf16.msra.mxu0 %v2768_v2  ;;  %v2786_v2 = vld [vmem:[%s3284_s8 + $0x20] ss:$8 sps:$4 sm:$0xff]  }
 0x453   : > { %2648 = vmatprep.subr.bf16.mxu0 %v3046_v5  ;;  %v1621_v22 = vpack.c.bf16 %v3535_v39, %v3535_v39  ;;  %v2387_v39 = vld [vmem:[%s3303_s15 + $0x3] ss:$0 sm:$0xff] }
 0x454   : > { %v2598_v40 = vpop.f32.mrf.mxu1 }
 0x456   : > { %v1341_v41 = vpop.f32.mrf.mxu1  ;;  %2649 = vmatpush3.bf16.msra.mxu0 %v2769_v3  ;;  %v2791_v3 = vld [vmem:[%s3284_s8 + $0x14] ss:$8 sps:$4 sm:$0xff]  }
 0x457   : > { %2650 = vmatprep.subr.bf16.mxu0 %v3046_v5 }
 0x458   : > { %v2599_v42 = vpop.f32.mrf.mxu1 }
 0x45a   : > { %2651 = vmatpush3.bf16.msra.mxu0 %v2770_v6  ;;  %v2789_v6 = vld [vmem:[%s3284_s8 + $0x10] ss:$8 sps:$4 sm:$0xff]  }
 0x464   : > { %v3537_v43 = vpop.f32.mrf.mxu0 }
 0x465   : > { %v1620_v28 = vpack.c.bf16 %v3537_v43, %v3537_v43 }
 0x466   : > { %v2592_v44 = vpop.f32.mrf.mxu0 }
 0x468   : > { %v1295_v45 = vpop.f32.mrf.mxu0 }
 0x46a   : > { %v2593_v46 = vpop.f32.mrf.mxu0 }
 0x4bc   : > { %v1384_v48 = vpop.f32.mrf.mxu0 }
 0x4bd   : > { %v1622_v49 = vpack.c.bf16 %v1384_v48, %v1384_v48 }
 0x4be   : > { %v2604_v51 = vpop.f32.mrf.mxu0 }
 0x4bf   : > { %1630 = vrot.lane.b32.xlu0 %v1622_v49, %s3050_s12  ;;  %v2773_v51 = vld [vmem:[%s3284_s8 + $0x74] ss:$8 sps:$4 sm:$0xff]  }
 0x4c0   : > { %v1387_v4 = vpop.f32.mrf.mxu0  ;;  %1909 = vmatprep.subr.bf16.mxu1 %v2773_v51 }
 0x4c1   : > { %1910 = vmatpush1.bf16.msra.mxu1 %v2771_v50 }
 0x4c2   : > { %v2605_v53 = vpop.f32.mrf.mxu0  ;;  %1911 = vmatprep.subr.bf16.mxu1 %v2776_v57 }
 0x4c4   : > { %v1476_v54 = vpop.f32.mrf.mxu0 }
 0x4c5   : > { %v1430_v55 = vpop.f32.mrf.mxu1  ;;  %v1624_v56 = vpack.c.bf16 %v1476_v54, %v1476_v54 }
 0x4c6   : > { %v1623_v58 = vpack.c.bf16 %v1430_v55, %v1430_v55  ;;  %v2616_v59 = vpop.f32.mrf.mxu0 }
 0x4c7   : > { %v2610_v60 = vpop.f32.mrf.mxu1  ;;  %1636 = vrot.lane.b32.xlu0 %v1624_v56, %s3049_s26  ;;  %v2779_v59 = vld [vmem:[%s3284_s8 + $0x54] ss:$8 sps:$4 sm:$0xff]  }
 0x4c8   : > { %1632 = vrot.lane.b32.xlu1 %v1623_v58, %s3050_s12  ;;  %v1479_v61 = vpop.f32.mrf.mxu0  ;;  %v2774_v58 = vld [vmem:[%s3284_s8 + $0x60] ss:$8 sps:$4 sm:$0xff]   ;;  %v2777_v60 = vld [vmem:[%s3284_s8 + $0x50] ss:$8 sps:$4 sm:$0xff]  }
 0x4c9   : > { %v1433_v62 = vpop.f32.mrf.mxu1  ;;  %1912 = vmatpush1.bf16.msra.mxu1 %v2774_v58  ;;  %v2780_v61 = vld [vmem:[%s3284_s8 + $0x40] ss:$8 sps:$4 sm:$0xff]  }
 0x4ca   : > { %v2617_v0 = vpop.f32.mrf.mxu0  ;;  %1913 = vmatprep.subr.bf16.mxu1 %v2779_v59  ;;  %v2782_v62 = vld [vmem:[%s3284_s8 + $0x44] ss:$8 sps:$4 sm:$0xff]  }
 0x4cb   : > { %v2611_v1 = vpop.f32.mrf.mxu1  ;;  %v2783_v0 = vld [vmem:[%s3284_s8 + $0x30] ss:$8 sps:$4 sm:$0xff]  }
 0x4cc   : > { %v2788_v1 = vld [vmem:[%s3284_s8 + $0x24] ss:$8 sps:$4 sm:$0xff]  }
 0x4cd   : > { %1914 = vmatpush1.bf16.msra.mxu1 %v2777_v60  ;;  %v2415_v60 = vld [vmem:[%s3308_s3] ss:$0 sm:$0xff] }
 0x4ce   : > { %1915 = vmatprep.subr.bf16.mxu1 %v2782_v62 }
 0x4d1   : > { %1916 = vmatpush1.bf16.msra.mxu1 %v2780_v61 }
 0x4d2   : > { %1917 = vmatprep.subr.bf16.mxu1 %v2785_v63 }
 0x4d5   : > { %1918 = vmatpush1.bf16.msra.mxu1 %v2783_v0 }
 0x4d6   : > { %1919 = vmatprep.subr.bf16.mxu1 %v2788_v1 }
 0x4d9   : > { %1920 = vmatpush1.bf16.msra.mxu1 %v2786_v2 }
 0x4da   : > { %1921 = vmatprep.subr.bf16.mxu1 %v2791_v3 }
 0x4dd   : > { %1922 = vmatpush1.bf16.msra.mxu1 %v2789_v6 }
 0x4fa   : > { %v1522_v7 = vpop.f32.mrf.mxu1 }
 0x4fb   : > { %v1625_v19 = vpack.c.bf16 %v1522_v7, %v1522_v7  ;;  %v2794_v7 = vld [vmem:[%s3284_s8 + $0x4] ss:$8 sps:$4 sm:$0xff]  }
 0x4fc   : > { %v2622_v8 = vpop.f32.mrf.mxu1  ;;  %1923 = vmatprep.subr.bf16.mxu1 %v2794_v7 }
 0x4fd   : > { %1638 = vrot.lane.b32.xlu1 %v1625_v19, %s3049_s26  ;;  %v1568_v13 = vpop.f32.mrf.mxu0  ;;  %v2792_v19 = vld [vmem:[%s3284_s8] ss:$8 sps:$4 sm:$0xff]  }
 0x4fe   : > { %v1525_v9 = vpop.f32.mrf.mxu1  ;;  %v1626_v10 = vpack.c.bf16 %v1568_v13, %v1568_v13  ;;  %1924 = vmatpush1.bf16.msra.mxu1 %v2792_v19  ;;  %v2795_v8 = vld [vmem:[%s3292_s13 + $0x78] sm:$0xff]  }
 0x4ff   : > { %v2628_v11 = vpop.f32.mrf.mxu0  ;;  %v2796_v13 = vld [vmem:[%s3292_s13 + $0x38] sm:$0xff]   ;;  %v2797_v9 = vld [vmem:[%s3292_s13 + $0x70] sm:$0xff]   ;;  %2498 = vmatprep.subr.bf16.mxu0 %v2795_v8 }
 0x500   : > { %v2623_v12 = vpop.f32.mrf.mxu1  ;;  %1642 = vrot.lane.b32.xlu0 %v1626_v10, %s3048_s7  ;;  %v2798_v10 = vld [vmem:[%s3292_s13 + $0x30] sm:$0xff]   ;;  %v2799_v11 = vld [vmem:[%s3292_s13 + $0x68] sm:$0xff]  }
 0x501   : > { %v1571_v14 = vpop.f32.mrf.mxu0  ;;  %v2800_v12 = vld [vmem:[%s3292_s13 + $0x28] sm:$0xff]  }
 0x502   : > { %v1614_v15 = vpop.f32.mrf.mxu1  ;;  %v2801_v14 = vld [vmem:[%s3292_s13 + $0x60] sm:$0xff]  }
 0x503   : > { %v1627_v16 = vpack.c.bf16 %v1614_v15, %v1614_v15  ;;  %v2629_v17 = vpop.f32.mrf.mxu0  ;;  %v2802_v15 = vld [vmem:[%s3292_s13 + $0x20] sm:$0xff]  }
 0x504   : > { %v2634_v18 = vpop.f32.mrf.mxu1  ;;  %v2804_v17 = vld [vmem:[%s3292_s13 + $0x18] sm:$0xff]  }
 0x505   : > { %1644 = vrot.lane.b32.xlu1 %v1627_v16, %s3048_s7  ;;  %v2803_v16 = vld [vmem:[%s3292_s13 + $0x58] sm:$0xff]  }
 0x506   : > { %v1617_v5 = vpop.f32.mrf.mxu1 }
 0x508   : > { %v2635_v20 = vpop.f32.mrf.mxu1 }
 0x531   : > { %v1631_v21 = vpop.permute.xlu0 %1630 }
 0x532   : > { %v1648_v30 = vsel %vm785_vm1, %v1620_v28, %v1631_v21  ;;  %v2397_v28 = vld [vmem:[%s3308_s3 + $0x1] ss:$0 sm:$0xff] }
 0x539   : > { %v1637_v24 = vpop.permute.xlu0 %1636 }
 0x53a   : > { %v1633_v23 = vpop.permute.xlu1 %1632  ;;  %v1654_v34 = vsel %vm1652_vm4, %v1648_v30, %v1637_v24 }
 0x53b   : > { %v1651_v31 = vsel %vm785_vm1, %v1621_v22, %v1633_v23 }
 0x56f   : > { %v1639_v27 = vpop.permute.xlu1 %1638 }
 0x570   : > { %v1656_v36 = vsel %vm1652_vm4, %v1651_v31, %v1639_v27 }
 0x572   : > { %v1643_v29 = vpop.permute.xlu0 %1642 }
 0x573   : > { %v1659_v38 = vsel %vm1657_vm5, %v1654_v34, %v1643_v29  ;;  %v2398_v34 = vld [vmem:[%s3308_s3 + $0x2] ss:$0 sm:$0xff] }
 0x577   : > { %v1645_v37 = vpop.permute.xlu1 %1644 }
 0x578   : > { %v1661_v40 = vsel %vm1657_vm5, %v1656_v36, %v1645_v37 }
 0x579   : > { %v2388_v41 = vcombine.low %v1659_v38, %v1661_v40 }
 0x57b   : > { %2653 = vmatmul.mubr.bf16.vlgmr.msra.gmra.mxu0 %v2388_v41  ;;  %v2805_v41 = vld [vmem:[%s3292_s13 + $0x50] sm:$0xff]  }
 0x57c   : > { %2499 = vmatpush3.bf16.msra.mxu0 %v2796_v13 }
 0x57d   : > { %2500 = vmatprep.subr.bf16.mxu0 %v2797_v9 }
 0x580   : > { %2501 = vmatpush3.bf16.msra.mxu0 %v2798_v10 }
 0x581   : > { %2502 = vmatprep.subr.bf16.mxu0 %v2799_v11 }
 0x584   : > { %2503 = vmatpush3.bf16.msra.mxu0 %v2800_v12 }
 0x585   : > { %2504 = vmatprep.subr.bf16.mxu0 %v2801_v14 }
 0x588   : > { %2505 = vmatpush3.bf16.msra.mxu0 %v2802_v15 }
 0x589   : > { %2506 = vmatprep.subr.bf16.mxu0 %v2803_v16 }
 0x58c   : > { %2507 = vmatpush3.bf16.msra.mxu0 %v2804_v17 }
 0x58d   : > { %2508 = vmatprep.subr.bf16.mxu0 %v2805_v41 }
 0x63b   : > { %v1756_v42 = vpop.f32.mrf.mxu0 }
 0x63c   : > { %v1757_v44 = vadd.f32 %v2387_v39, %v1756_v42  ;;  %v2807_v42 = vld [vmem:[%s3292_s13 + $0x48] sm:$0xff]  }
 0x63d   : > { %v2654_v43 = vpop.f32.mrf.mxu0 }
 0x63e   : > { %v1763_v45 = vadd.f32 %v1757_v44, %v3343_v25  ;;  %v2808_v44 = vld [vmem:[%s3292_s13 + $0x8] sm:$0xff]   ;;  %v2809_v43 = vld [vmem:[%s3292_s13 + $0x40] sm:$0xff]  }
 0x63f   : > { %v1759_v46 = vpop.f32.mrf.mxu0 }
 0x640   : > { %v1760_v47 = vadd.f32 %v2387_v39, %v1759_v46  ;;  %1765 = vadd.xlane.f32.xlu0 %v1763_v45  ;;  %v2806_v39 = vld [vmem:[%s3292_s13 + $0x10] sm:$0xff]   ;;  %v1817_v46 = vld [vmem:[%s3290_s16] sm:$0x3] }
 0x641   : > { %v2655_v48 = vpop.f32.mrf.mxu0  ;;  %2509 = vmatpush3.bf16.msra.mxu0 %v2806_v39 }
 0x642   : > { %v1764_v49 = vadd.f32 %v1760_v47, %v3345_v26  ;;  %2510 = vmatprep.subr.bf16.mxu0 %v2807_v42  ;;  %v1826_v48 = vrot.slane %v1817_v46, %v508_v35 }
 0x644   : > { %1767 = vadd.xlane.f32.xlu1 %v1764_v49 }
 0x645   : > { %2511 = vmatpush3.bf16.msra.mxu0 %v2808_v44 }
 0x646   : > { %2512 = vmatprep.subr.bf16.mxu0 %v2809_v43 }
 0x6c9   : > { %v1766_v4 = vpop.xlane.xlu0 %1765 }
 0x6ca   : > { %v1770_v52 = vmul.f32 0.0078125, %v1766_v4 }
 0x6cc   : > { %v3571_v53 = vsub.f32 %v1763_v45, %v1770_v52  ;;  %v2810_v45 = vld [vmem:[%s3292_s13] sm:$0xff]  }
 0x6cd   : > { %v1768_v25 = vpop.xlane.xlu1 %1767  ;;  %2513 = vmatpush3.bf16.msra.mxu0 %v2810_v45 }
 0x6ce   : > { %v1771_v54 = vmul.f32 0.0078125, %v1768_v25  ;;  %v1774_v26 = vmul.f32 %v3571_v53, %v3571_v53 }
 0x6d0   : > { %v3575_v55 = vsub.f32 %v1764_v49, %v1771_v54  ;;  %1776 = vadd.xlane.f32.xlu0 %v1774_v26  ;;  %v1822_v49 = vrot.slane %v1817_v46, %v504_v33 }
 0x6d2   : > { %v1775_v56 = vmul.f32 %v3575_v55, %v3575_v55 }
 0x6d4   : > { %1778 = vadd.xlane.f32.xlu0 %v1775_v56 }
 0x759   : > { %v1777_v18 = vpop.xlane.xlu0 %1776 }
 0x75a   : > { %v1780_v5 = vmul.f32 0.0078125, %v1777_v18 }
 0x75c   : > { %v1782_v20 = vadd.f32 1e-05, %v1780_v5 }
 0x75d   : > { %v1779_v21 = vpop.xlane.xlu0 %1778 }
 0x75e   : > { %2843 = vrsqrt.f32 %v1782_v20  ;;  %v1781_v23 = vmul.f32 0.0078125, %v1779_v21  ;;  %v2432_v20 = vld [vmem:[%s3308_s3 + $0x3] ss:$0 sm:$0xff] }
 0x760   : > { %v1783_v24 = vadd.f32 1e-05, %v1781_v23  ;;  %v2433_v23 = vld [vmem:[%s3308_s3 + $0x4] ss:$0 sm:$0xff] }
 0x762   : > { %2845 = vrsqrt.f32 %v1783_v24 }
 0x76b   : > { %v2844_v27 = vpop.eup %2843 }
 0x76c   : > { %v1786_v22 = vmul.f32 %v2844_v27, %v3571_v53 }
 0x76e   : > { %v1792_v31 = vmul.f32 %v2397_v28, %v1786_v22 }
 0x76f   : > { %v2846_v29 = vpop.eup %2845 }
 0x770   : > { %v1787_v30 = vmul.f32 %v2846_v29, %v3575_v55  ;;  %v1798_v37 = vadd.f32 %v2398_v34, %v1792_v31 }
 0x772   : > { %v1793_v36 = vmul.f32 %v2397_v28, %v1787_v30 }
 0x774   : > { %v1799_v38 = vadd.f32 %v2398_v34, %v1793_v36 }
 0x776   : > { %v1800_v40 = vpack.c.bf16 %v1799_v38, %v1798_v37 }
 0x778   : > { %1942 = vmatmul.mubr.bf16.vlgmr.msra.gmra.mxu1 %v1800_v40 }
 0x838   : > { %v1943_v47 = vpop.f32.mrf.mxu1 }
 0x839   : > { %v1944_v53 = vadd.f32 %v1943_v47, %v1822_v49 }
 0x83a   : > { %v1945_v50 = vpop.f32.mrf.mxu1 }
 0x83b   : > { %v1946_v4 = vadd.f32 %v1945_v50, %v1826_v48  ;;  %v1952_v57 = vmax.f32 %v1944_v53, 0.0 }
 0x83c   : > { %v1947_v51 = vpop.f32.mrf.mxu1 }
 0x83d   : > { %v1948_v52 = vadd.f32 %v1947_v51, %v1822_v49  ;;  %v1953_v55 = vmax.f32 %v1946_v4, 0.0 }
 0x83e   : > { %v1949_v25 = vpop.f32.mrf.mxu1 }
 0x83f   : > { %v1950_v54 = vadd.f32 %v1949_v25, %v1826_v48  ;;  %v1954_v26 = vmax.f32 %v1948_v52, 0.0 }
 0x841   : > { %v1955_v56 = vmax.f32 %v1950_v54, 0.0  ;;  %v1956_v59 = vpack.c.bf16 %v1954_v26, %v1952_v57 }
 0x843   : > { %v1957_v58 = vpack.c.bf16 %v1955_v56, %v1953_v55 }
 0x845   : > { %2122 = vmatprep.mubr.bf16.mxu0 %v1957_v58 }
 0x846   : > { %2123 = vmatmul.mubr.bf16.vlgmr.msra.gmra.mxu0 %v1956_v59 }
 0x906   : > { %v2514_v35 = vpop.f32.mrf.mxu0 }
 0x908   : > { %v2515_v32 = vpop.f32.mrf.mxu0 }
 0x909   : > { %v2516_v33 = vadd.f32 %v2515_v32, %v2514_v35 }
 0x90a   : > { %v2517_v61 = vpop.f32.mrf.mxu0 }
 0x90b   : > { %v2125_v62 = vadd.f32 %v2516_v33, %v2415_v60 }
 0x90c   : > { %v2518_v63 = vpop.f32.mrf.mxu0 }
 0x90d   : > { %v2519_v0 = vadd.f32 %v2518_v63, %v2517_v61  ;;  %v2131_v1 = vadd.f32 %v2125_v62, %v1798_v37 }
 0x90f   : > { %v2128_v2 = vadd.f32 %v2519_v0, %v2415_v60  ;;  %2133 = vadd.xlane.f32.xlu1 %v2131_v1 }
 0x911   : > { %v2132_v3 = vadd.f32 %v2128_v2, %v1799_v38 }
 0x913   : > { %2135 = vadd.xlane.f32.xlu0 %v2132_v3 }
 0x998   : > { %v2134_v6 = vpop.xlane.xlu1 %2133 }
 0x999   : > { %v2137_v7 = vmul.f32 0.0078125, %v2134_v6 }
 0x99b   : > { %v2139_v19 = vsub.f32 %v2131_v1, %v2137_v7 }
 0x99c   : > { %v2136_v8 = vpop.xlane.xlu0 %2135 }
 0x99d   : > { %v2138_v13 = vmul.f32 0.0078125, %v2136_v8  ;;  %v2141_v9 = vmul.f32 %v2139_v19, %v2139_v19 }
 0x99f   : > { %v2140_v10 = vsub.f32 %v2132_v3, %v2138_v13  ;;  %2143 = vadd.xlane.f32.xlu1 %v2141_v9 }
 0x9a1   : > { %v2142_v11 = vmul.f32 %v2140_v10, %v2140_v10 }
 0x9a3   : > { %2145 = vadd.xlane.f32.xlu0 %v2142_v11 }
 0xa28   : > { %v2144_v12 = vpop.xlane.xlu1 %2143 }
 0xa29   : > { %v2147_v14 = vmul.f32 0.0078125, %v2144_v12 }
 0xa2b   : > { %v2149_v15 = vadd.f32 1e-05, %v2147_v14 }
 0xa2c   : > { %v2146_v16 = vpop.xlane.xlu0 %2145 }
 0xa2d   : > { %2847 = vrsqrt.f32 %v2149_v15  ;;  %v2148_v17 = vmul.f32 0.0078125, %v2146_v16 }
 0xa2f   : > { %v2150_v18 = vadd.f32 1e-05, %v2148_v17 }
 0xa31   : > { %2849 = vrsqrt.f32 %v2150_v18 }
 0xa3a   : > { %v2848_v5 = vpop.eup %2847 }
 0xa3b   : > { %v2153_v21 = vmul.f32 %v2848_v5, %v2139_v19 }
 0xa3d   : > { %v2159_v24 = vmul.f32 %v2432_v20, %v2153_v21 }
 0xa3e   : > { %v2850_v27 = vpop.eup %2849 }
 0xa3f   : > { %v2154_v22 = vmul.f32 %v2850_v27, %v2140_v10  ;;  %v2165_v28 = vadd.f32 %v2433_v23, %v2159_v24 }
 0xa41   : > { %v2160_v29 = vmul.f32 %v2432_v20, %v2154_v22  ;;  %2167 = vst [vmem:[#allocation10] sm:$0xff] %v2165_v28 }
 0xa43   : > { %v2166_v30 = vadd.f32 %v2433_v23, %v2160_v29 }
 0xa45   : > { %2168 = vst [vmem:[#allocation10 + $0x8] sm:$0xff] %v2166_v30 }
 0xa46   : > { %2976 = shalt.err (!%p2973_p2)
}
 0xa47   : > { %s3052_s8 = smov 128   ;;  %s3053_s18 = smov 8  }
 0xa48   : > { %s3676_s13 = sld [smem:[#allocation20_spill]] }
 0xa4e   : > { %2665 = dma.vmem_to_hbm [thread:$0]  (%p2682_p9), %s2176_s11, 256, %s3676_s13, [#allocation4], %s3052_s8, %s3052_s8, %s3053_s18  }
 0xa4f   : > { %3016 = dma.done.wait (%p2682_p9), [#allocation4], 256  }
 0xa50   : > { %3018 = vsyncadd (%p2682_p9), [#allocation4], 4294967040 }
 0xa51 PF: > { %s3677_s27 = sld [smem:[#allocation16_spill]]  ;;  %s3680_s24 = smov %s3025_s25 }
 0xa52   : > { %s3678_s21 = sld [smem:[#allocation15_spill]] }
 0xa53   : > { %s3679_s26 = sld [smem:[#allocation17_spill]] }
 0xa57   : > { %p24_p3 = scmp.ge.s32.totalorder %s3677_s27, 4  }
 0xa58   : > { %s3681_s25 = smov %s3678_s21 }
 0xa59   :  { %26 = sbr.rel (!%p24_p3) target bundleno = 12 (0xc), region = 132 }
 0xa5e   :  { %2191 = vsyncpa [#allocation3], 1 }
 0xa5f   :  { %2193 = vsyncpa [#allocation3 + $0x1], 1 }
 0xa60   :  { %2194 = vsyncpa [#allocation6], 1 }
 0xa61   :  { %2196 = vsyncpa [#allocation6 + $0x1], 1 }
 0xa62   :  { %2197 = vsyncpa [#allocation9], 1 }
 0xa63   :  { %2199 = vsyncpa [#allocation9 + $0x1], 1 }
 0xa64   :  { %2200 = vsyncpa [#allocation4], 1 }
 0xa65   :  { %2202 = vsyncpa [#allocation4 + $0x1], 1 }

</bundles_post_ra>
